<compile_context>
chip_gen: v6e
topology: v6e:2x2x1
jax: 0.10.0
libtpu: 0.0.40
codegen_flags: <defaults>
</compile_context>

<pallas_src>
import jax
import jax.numpy as jnp
from jax.experimental import pallas as pl
from jax.experimental.pallas import tpu as pltpu


def _last_rows(xf, st3, Bb, T, D):
    """time_shift: row (b, t) -> x[b, t-1] for t>0, state[b] for t==0.

    xf is the (Bb*T, D) flattened f32 block, st3 is (Bb, 1, D) f32.
    Rolling the flattened rows by one puts x[b, t-1] in row (b, t); rows at
    t==0 picked up the previous batch element's last row and are replaced by
    the per-batch state via a cheap (Bb, T, 1) mask (no % / no broadcast_to).
    """
    rolled = pltpu.roll(xf, shift=1, axis=0)                       # XLU
    t0 = jax.lax.broadcasted_iota(jnp.int32, (Bb, T, 1), 1) == 0   # tiny mask
    last3 = jnp.where(t0, st3, rolled.reshape(Bb, T, D))
    return last3.reshape(Bb * T, D)


def ffn_kernel(x_ref, state_ref, tmk_ref, tmr_ref, wk_ref, wr_ref, wv_ref,
               out_ref, xk_scr, acc_scr):
    # x_ref:     (Bb, T, D)   block of batch elements (resident across f steps)
    # state_ref: (Bb, 1, D)   last_x at t = -1 per batch element
    # tmk/tmr:   (1, D)       time-mix parameters (f32, single-buffered)
    # wk: (D, tf)  wr: (D, D)  wv: (tf, D)   bf16, pre-transposed
    # xk_scr: (Bb*T, D) bf16 scratch;  acc_scr: (Bb*T, D) f32 vk accumulator
    f = pl.program_id(1)
    nf = pl.num_programs(1)
    Bb, T, D = x_ref.shape
    R = Bb * T

    @pl.when(f == 0)
    def _():
        xf = x_ref[...].astype(jnp.float32).reshape(R, D)
        st3 = state_ref[...].astype(jnp.float32)
        last = _last_rows(xf, st3, Bb, T, D)
        tmk = tmk_ref[...].astype(jnp.float32)                  # (1, D) broadcasts
        xk = xf * tmk + last * (1.0 - tmk)
        xk_scr[...] = xk.astype(jnp.bfloat16)
        acc_scr[...] = jnp.zeros_like(acc_scr)

    # Every f step: accumulate relu(xk @ wk_tile)^2 @ wv_tile into the f32 acc.
    k = jnp.dot(xk_scr[...], wk_ref[...],
                preferred_element_type=jnp.float32)              # (R, tf)
    kk = jnp.maximum(k, 0.0)
    kk = (kk * kk).astype(jnp.bfloat16)                          # relu(k)^2
    acc_scr[...] += jnp.dot(kk, wv_ref[...],
                            preferred_element_type=jnp.float32)  # (R, D)

    @pl.when(f == nf - 1)
    def _():
        xf = x_ref[...].astype(jnp.float32).reshape(R, D)
        st3 = state_ref[...].astype(jnp.float32)
        last = _last_rows(xf, st3, Bb, T, D)
        tmr = tmr_ref[...].astype(jnp.float32)
        xr = (xf * tmr + last * (1.0 - tmr)).astype(jnp.bfloat16)
        r = jnp.dot(xr, wr_ref[...],
                    preferred_element_type=jnp.float32)          # (R, D)
        out = jax.nn.sigmoid(r) * acc_scr[...]                   # f32 (EUP + VPU)
        out_ref[...] = out.reshape(Bb, T, D).astype(out_ref.dtype)


def _pick_batch_block(B, T, target_rows=256, min_grid=2):
    """Largest divisor of B giving ~target_rows rows per step while keeping
    at least `min_grid` grid steps (so v7x's 2 TensorCores both get work)."""
    bb = max(1, min(B, target_rows // max(T, 1)))
    if B >= min_grid:
        bb = min(bb, B // min_grid)
    bb = max(bb, 1)
    while B % bb:
        bb -= 1
    return bb


def _pick_f_block(F, target=1024):
    """Largest multiple-of-128 divisor of F that is <= target (or F itself)."""
    if F <= target:
        return F
    tf = (target // 128) * 128
    while tf >= 128:
        if F % tf == 0:
            return tf
        tf -= 128
    return F


def _vmem_limit_bytes(frac=0.75, fallback=48 * 1024 * 1024):
    """~75% of physical VMEM: ~96 MiB on v5e/v6e, ~48 MiB on v7x."""
    try:
        cap = pltpu.get_tpu_info().vmem_capacity_bytes
        return int(cap * frac)
    except Exception:
        return fallback


def feed_forward(x, state, time_mix_k, time_mix_r, wk, wr, wv, *,
                 batch_block=None, f_block=None):
    """x: (B, T, D); state: (B, 1, D); time_mix_*: (1, 1, D).
    Weights pre-transposed: wk = key.weight.T (D, F), wr = receptance.weight.T
    (D, D), wv = value.weight.T (F, D)."""
    B, T, D = x.shape
    F_dim = wk.shape[1]

    if batch_block is None:
        batch_block = _pick_batch_block(B, T)
    assert B % batch_block == 0, "batch_block must divide B"
    if f_block is None:
        f_block = _pick_f_block(F_dim)
    assert F_dim % f_block == 0, "f_block must divide ffn_dim"

    nb = B // batch_block
    nf = F_dim // f_block
    R = batch_block * T

    tmk = time_mix_k.reshape(1, D).astype(jnp.float32)
    tmr = time_mix_r.reshape(1, D).astype(jnp.float32)
    # bf16 weights: native MXU input dtype, half the VMEM/DMA vs f32.
    wk_b = wk.astype(jnp.bfloat16)
    wr_b = wr.astype(jnp.bfloat16)
    wv_b = wv.astype(jnp.bfloat16)

    const1 = pl.Buffered(1)   # single-buffer blocks whose index never changes
    if nf == 1:
        wk_spec = pl.BlockSpec((D, f_block), lambda b, f: (0, f), pipeline_mode=const1)
        wv_spec = pl.BlockSpec((f_block, D), lambda b, f: (f, 0), pipeline_mode=const1)
    else:
        # F-tiled: keep default double-buffering so weight DMA pipelines under MXU.
        wk_spec = pl.BlockSpec((D, f_block), lambda b, f: (0, f))
        wv_spec = pl.BlockSpec((f_block, D), lambda b, f: (f, 0))

    itemsize = jnp.dtype(x.dtype).itemsize
    flops = 2 * B * T * (D * F_dim + D * D + F_dim * D)
    bytes_accessed = (2 * B * T * D * itemsize                  # x in, out
                      + B * D * itemsize                        # state
                      + 2 * (D * F_dim + D * D + F_dim * D)     # bf16 weights
                      + 2 * D * 4)                              # time-mix
    cost = pl.CostEstimate(flops=flops, transcendentals=B * T * D,
                           bytes_accessed=bytes_accessed)

    out = pl.pallas_call(
        ffn_kernel,
        out_shape=jax.ShapeDtypeStruct((B, T, D), x.dtype),
        grid_spec=pltpu.PrefetchScalarGridSpec(
            num_scalar_prefetch=0,
            grid=(nb, nf),
            in_specs=[
                pl.BlockSpec((batch_block, T, D), lambda b, f: (b, 0, 0)),   # x
                pl.BlockSpec((batch_block, 1, D), lambda b, f: (b, 0, 0)),   # state
                pl.BlockSpec((1, D), lambda b, f: (0, 0), pipeline_mode=const1),  # tmk
                pl.BlockSpec((1, D), lambda b, f: (0, 0), pipeline_mode=const1),  # tmr
                wk_spec,                                                     # wk
                pl.BlockSpec((D, D), lambda b, f: (0, 0), pipeline_mode=const1),  # wr
                wv_spec,                                                     # wv
            ],
            out_specs=pl.BlockSpec((batch_block, T, D), lambda b, f: (b, 0, 0)),
            scratch_shapes=[
                pltpu.VMEM((R, D), jnp.bfloat16),   # xk (mixed activations)
                pltpu.VMEM((R, D), jnp.float32),    # vk accumulator
            ],
        ),
        compiler_params=pltpu.CompilerParams(
            dimension_semantics=("parallel", "arbitrary"),
            vmem_limit_bytes=_vmem_limit_bytes(),
        ),
        cost_estimate=cost,
    )(x, state, tmk, tmr, wk_b, wr_b, wv_b)

    # next_state is just the last time step of the input; no kernel work needed.
    return out, x[:, -1:, :]


def feed_forward_ref(x, state, time_mix_k, time_mix_r, wk, wr, wv):
    """Pure-JAX f32 reference matching the PyTorch forward."""
    last = jnp.concatenate([state, x[:, :-1, :]], axis=1)
    xk = x * time_mix_k + last * (1.0 - time_mix_k)
    xr = x * time_mix_r + last * (1.0 - time_mix_r)
    k = xk @ wk
    r = xr @ wr
    vk = (jnp.maximum(k, 0.0) ** 2) @ wv
    return jax.nn.sigmoid(r) * vk, x[:, -1:, :]


if __name__ == "__main__":
    # dim = 128 (lane-dense), ffn_dim = 4*dim = 512; 8 batch x 32 time
    # -> batch_block = 4 (128 rows/step, grid[0] = 2 for v7x's 2 TCs), nf = 1.
    B, T, D, F = 8, 32, 128, 512

    key = jax.random.PRNGKey(0)
    k1, k2, k3, k4, k5, k6 = jax.random.split(key, 6)

    x = jax.random.normal(k1, (B, T, D), dtype=jnp.float32)
    # state=None in the PyTorch call -> init_state zeros repeated over batch
    state = jnp.zeros((B, 1, D), dtype=jnp.float32)

    time_mix_k = jax.random.uniform(k2, (1, 1, D), dtype=jnp.float32)
    time_mix_r = jax.random.uniform(k3, (1, 1, D), dtype=jnp.float32)

    # nn.Linear(in, out, bias=False).weight has shape (out, in); pass transposes
    # so the kernel does x @ W.T directly.
    wk = (jax.random.normal(k4, (F, D), dtype=jnp.float32) * 0.05).T   # (D, F)
    wr = (jax.random.normal(k5, (D, D), dtype=jnp.float32) * 0.05).T   # (D, D)
    wv = (jax.random.normal(k6, (D, F), dtype=jnp.float32) * 0.05).T   # (F, D)

    out, next_state = feed_forward(x, state, time_mix_k, time_mix_r, wk, wr, wv)
    jax.block_until_ready((out, next_state))

    ref_out, ref_state = feed_forward_ref(x, state, time_mix_k, time_mix_r, wk, wr, wv)
    # Matmul inputs are rounded to bf16 (f32 accumulation), hence the tolerance.
    assert jnp.allclose(out, ref_out, atol=5e-2, rtol=5e-2), "output mismatch"
    assert jnp.array_equal(next_state, ref_state), "state mismatch"

    print("KERNEL_OK")
</pallas_src>

<mosaic_0001>
module attributes {stable_mosaic.version = 11 : i64} {
  func.func @ffn_kernel(%arg0: i32, %arg1: i32, %arg2: memref<4x32x128xf32, #tpu.memory_space<vmem>>, %arg3: memref<4x1x128xf32, #tpu.memory_space<vmem>>, %arg4: memref<1x128xf32, #tpu.memory_space<vmem>>, %arg5: memref<1x128xf32, #tpu.memory_space<vmem>>, %arg6: memref<128x512xbf16, #tpu.memory_space<vmem>>, %arg7: memref<128x128xbf16, #tpu.memory_space<vmem>>, %arg8: memref<512x128xbf16, #tpu.memory_space<vmem>>, %arg9: memref<4x32x128xf32, #tpu.memory_space<vmem>>, %arg10: memref<128x128xbf16, #tpu.memory_space<vmem>>, %arg11: memref<128x128xf32, #tpu.memory_space<vmem>>) attributes {dimension_semantics = [#tpu.dimension_semantics<parallel>, #tpu.dimension_semantics<arbitrary>], iteration_bounds = array<i64: 2, 1>, scalar_prefetch = 0 : i64, scratch_operands = 2 : i64, tpu.core_type = #tpu.core_type<tc>, window_params = [{transform_indices = @transform_0, window_bounds = array<i64: 4, 32, 128>}, {transform_indices = @transform_1, window_bounds = array<i64: 4, 1, 128>}, {pipeline_mode = #tpu.pipeline_mode<synchronous>, transform_indices = @transform_2, window_bounds = array<i64: 1, 128>}, {pipeline_mode = #tpu.pipeline_mode<synchronous>, transform_indices = @transform_3, window_bounds = array<i64: 1, 128>}, {pipeline_mode = #tpu.pipeline_mode<synchronous>, transform_indices = @transform_4, window_bounds = array<i64: 128, 512>}, {pipeline_mode = #tpu.pipeline_mode<synchronous>, transform_indices = @transform_5, window_bounds = array<i64: 128, 128>}, {pipeline_mode = #tpu.pipeline_mode<synchronous>, transform_indices = @transform_6, window_bounds = array<i64: 512, 128>}, {transform_indices = @transform_7, window_bounds = array<i64: 4, 32, 128>}]} {
    %c0_i32 = arith.constant 0 : i32
    %0 = arith.cmpi eq, %arg1, %c0_i32 : i32
    %1 = arith.extui %0 : i1 to i32
    %c0_i32_0 = arith.constant 0 : i32
    %2 = arith.cmpi ne, %1, %c0_i32_0 : i32
    scf.if %2 {
      %c0_14 = arith.constant 0 : index
      %c0_15 = arith.constant 0 : index
      %c0_16 = arith.constant 0 : index
      %18 = vector.load %arg2[%c0_14, %c0_15, %c0_16] : memref<4x32x128xf32, #tpu.memory_space<vmem>>, vector<4x32x128xf32>
      %19 = vector.shape_cast %18 : vector<4x32x128xf32> to vector<128x128xf32>
      %c0_17 = arith.constant 0 : index
      %c0_18 = arith.constant 0 : index
      %c0_19 = arith.constant 0 : index
      %20 = vector.load %arg3[%c0_17, %c0_18, %c0_19] : memref<4x1x128xf32, #tpu.memory_space<vmem>>, vector<4x1x128xf32>
      %c1_i32 = arith.constant 1 : i32
      %21 = tpu.dynamic_rotate %19 by %c1_i32 dim 0 : vector<128x128xf32>, i32 -> vector<128x128xf32>
      %22 = tpu.iota {dimensions = array<i32: 1>} : vector<4x32x1xi32>
      %c0_i32_20 = arith.constant 0 : i32
      %23 = vector.broadcast %c0_i32_20 : i32 to vector<4x32x1xi32>
      %24 = arith.cmpi eq, %22, %23 : vector<4x32x1xi32>
      %25 = vector.shape_cast %21 : vector<128x128xf32> to vector<4x32x128xf32>
      %26 = vector.shape_cast %24 : vector<4x32x1xi1> to vector<4x32x1xi1>
      %27 = vector.broadcast %26 : vector<4x32x1xi1> to vector<4x32x128xi1>
      %28 = vector.shape_cast %20 : vector<4x1x128xf32> to vector<4x1x128xf32>
      %29 = vector.broadcast %28 : vector<4x1x128xf32> to vector<4x32x128xf32>
      %30 = arith.select %27, %29, %25 : vector<4x32x128xi1>, vector<4x32x128xf32>
      %31 = vector.shape_cast %30 : vector<4x32x128xf32> to vector<128x128xf32>
      %c0_21 = arith.constant 0 : index
      %c0_22 = arith.constant 0 : index
      %32 = vector.load %arg4[%c0_21, %c0_22] : memref<1x128xf32, #tpu.memory_space<vmem>>, vector<1x128xf32>
      %33 = vector.broadcast %32 : vector<1x128xf32> to vector<128x128xf32>
      %34 = arith.mulf %19, %33 : vector<128x128xf32>
      %cst_23 = arith.constant 1.000000e+00 : f32
      %35 = vector.broadcast %cst_23 : f32 to vector<1x128xf32>
      %36 = arith.subf %35, %32 : vector<1x128xf32>
      %37 = vector.broadcast %36 : vector<1x128xf32> to vector<128x128xf32>
      %38 = arith.mulf %31, %37 : vector<128x128xf32>
      %39 = arith.addf %34, %38 : vector<128x128xf32>
      %40 = arith.truncf %39 : vector<128x128xf32> to vector<128x128xbf16>
      %c0_24 = arith.constant 0 : index
      %c0_25 = arith.constant 0 : index
      %41 = vector.load %arg10[%c0_24, %c0_25] : memref<128x128xbf16, #tpu.memory_space<vmem>>, vector<128x128xbf16>
      tpu.vector_store %arg10[%c0_24, %c0_25], %40 {strides = array<i32>} : memref<128x128xbf16, #tpu.memory_space<vmem>>, vector<128x128xbf16>,
      %cst_26 = arith.constant 0.000000e+00 : f32
      %42 = vector.broadcast %cst_26 : f32 to vector<128x128xf32>
      %c0_27 = arith.constant 0 : index
      %c0_28 = arith.constant 0 : index
      %43 = vector.load %arg11[%c0_27, %c0_28] : memref<128x128xf32, #tpu.memory_space<vmem>>, vector<128x128xf32>
      tpu.vector_store %arg11[%c0_27, %c0_28], %42 {strides = array<i32>} : memref<128x128xf32, #tpu.memory_space<vmem>>, vector<128x128xf32>,
    } else {
    }
    %c0 = arith.constant 0 : index
    %c0_1 = arith.constant 0 : index
    %3 = vector.load %arg10[%c0, %c0_1] : memref<128x128xbf16, #tpu.memory_space<vmem>>, vector<128x128xbf16>
    %c0_2 = arith.constant 0 : index
    %c0_3 = arith.constant 0 : index
    %4 = vector.load %arg6[%c0_2, %c0_3] : memref<128x512xbf16, #tpu.memory_space<vmem>>, vector<128x512xbf16>
    %cst = arith.constant dense<0.000000e+00> : vector<128x512xf32>
    %5 = tpu.matmul %3, %4, %cst {dimension_numbers = #tpu.dot_dimension_numbers<[1], [0], [0], [1], [0, 0, 1, 1], [], []>} : vector<128x128xbf16>, vector<128x512xbf16>, vector<128x512xf32> -> vector<128x512xf32>
    %cst_4 = arith.constant 0.000000e+00 : f32
    %6 = vector.broadcast %cst_4 : f32 to vector<128x512xf32>
    %7 = arith.maximumf %5, %6 : vector<128x512xf32>
    %8 = arith.mulf %7, %7 : vector<128x512xf32>
    %9 = arith.truncf %8 : vector<128x512xf32> to vector<128x512xbf16>
    %c0_5 = arith.constant 0 : index
    %c0_6 = arith.constant 0 : index
    %10 = vector.load %arg11[%c0_5, %c0_6] : memref<128x128xf32, #tpu.memory_space<vmem>>, vector<128x128xf32>
    %c0_7 = arith.constant 0 : index
    %c0_8 = arith.constant 0 : index
    %11 = vector.load %arg8[%c0_7, %c0_8] : memref<512x128xbf16, #tpu.memory_space<vmem>>, vector<512x128xbf16>
    %cst_9 = arith.constant dense<0.000000e+00> : vector<128x128xf32>
    %12 = tpu.matmul %9, %11, %cst_9 {dimension_numbers = #tpu.dot_dimension_numbers<[1], [0], [0], [1], [0, 0, 1, 1], [], []>} : vector<128x512xbf16>, vector<512x128xbf16>, vector<128x128xf32> -> vector<128x128xf32>
    %13 = arith.addf %10, %12 : vector<128x128xf32>
    %c0_10 = arith.constant 0 : index
    %c0_11 = arith.constant 0 : index
    %14 = vector.load %arg11[%c0_10, %c0_11] : memref<128x128xf32, #tpu.memory_space<vmem>>, vector<128x128xf32>
    tpu.vector_store %arg11[%c0_10, %c0_11], %13 {strides = array<i32>} : memref<128x128xf32, #tpu.memory_space<vmem>>, vector<128x128xf32>,
    %c0_i32_12 = arith.constant 0 : i32
    %15 = arith.cmpi eq, %arg1, %c0_i32_12 : i32
    %16 = arith.extui %15 : i1 to i32
    %c0_i32_13 = arith.constant 0 : i32
    %17 = arith.cmpi ne, %16, %c0_i32_13 : i32
    scf.if %17 {
      %c0_14 = arith.constant 0 : index
      %c0_15 = arith.constant 0 : index
      %c0_16 = arith.constant 0 : index
      %18 = vector.load %arg2[%c0_14, %c0_15, %c0_16] : memref<4x32x128xf32, #tpu.memory_space<vmem>>, vector<4x32x128xf32>
      %19 = vector.shape_cast %18 : vector<4x32x128xf32> to vector<128x128xf32>
      %c0_17 = arith.constant 0 : index
      %c0_18 = arith.constant 0 : index
      %c0_19 = arith.constant 0 : index
      %20 = vector.load %arg3[%c0_17, %c0_18, %c0_19] : memref<4x1x128xf32, #tpu.memory_space<vmem>>, vector<4x1x128xf32>
      %c1_i32 = arith.constant 1 : i32
      %21 = tpu.dynamic_rotate %19 by %c1_i32 dim 0 : vector<128x128xf32>, i32 -> vector<128x128xf32>
      %22 = tpu.iota {dimensions = array<i32: 1>} : vector<4x32x1xi32>
      %c0_i32_20 = arith.constant 0 : i32
      %23 = vector.broadcast %c0_i32_20 : i32 to vector<4x32x1xi32>
      %24 = arith.cmpi eq, %22, %23 : vector<4x32x1xi32>
      %25 = vector.shape_cast %21 : vector<128x128xf32> to vector<4x32x128xf32>
      %26 = vector.shape_cast %24 : vector<4x32x1xi1> to vector<4x32x1xi1>
      %27 = vector.broadcast %26 : vector<4x32x1xi1> to vector<4x32x128xi1>
      %28 = vector.shape_cast %20 : vector<4x1x128xf32> to vector<4x1x128xf32>
      %29 = vector.broadcast %28 : vector<4x1x128xf32> to vector<4x32x128xf32>
      %30 = arith.select %27, %29, %25 : vector<4x32x128xi1>, vector<4x32x128xf32>
      %31 = vector.shape_cast %30 : vector<4x32x128xf32> to vector<128x128xf32>
      %c0_21 = arith.constant 0 : index
      %c0_22 = arith.constant 0 : index
      %32 = vector.load %arg5[%c0_21, %c0_22] : memref<1x128xf32, #tpu.memory_space<vmem>>, vector<1x128xf32>
      %33 = vector.broadcast %32 : vector<1x128xf32> to vector<128x128xf32>
      %34 = arith.mulf %19, %33 : vector<128x128xf32>
      %cst_23 = arith.constant 1.000000e+00 : f32
      %35 = vector.broadcast %cst_23 : f32 to vector<1x128xf32>
      %36 = arith.subf %35, %32 : vector<1x128xf32>
      %37 = vector.broadcast %36 : vector<1x128xf32> to vector<128x128xf32>
      %38 = arith.mulf %31, %37 : vector<128x128xf32>
      %39 = arith.addf %34, %38 : vector<128x128xf32>
      %40 = arith.truncf %39 : vector<128x128xf32> to vector<128x128xbf16>
      %c0_24 = arith.constant 0 : index
      %c0_25 = arith.constant 0 : index
      %41 = vector.load %arg7[%c0_24, %c0_25] : memref<128x128xbf16, #tpu.memory_space<vmem>>, vector<128x128xbf16>
      %cst_26 = arith.constant dense<0.000000e+00> : vector<128x128xf32>
      %42 = tpu.matmul %40, %41, %cst_26 {dimension_numbers = #tpu.dot_dimension_numbers<[1], [0], [0], [1], [0, 0, 1, 1], [], []>} : vector<128x128xbf16>, vector<128x128xbf16>, vector<128x128xf32> -> vector<128x128xf32>
      %43 = arith.negf %42 : vector<128x128xf32>
      %44 = math.exp %43 : vector<128x128xf32>
      %cst_27 = arith.constant 1.000000e+00 : f32
      %45 = vector.broadcast %cst_27 : f32 to vector<128x128xf32>
      %46 = arith.addf %45, %44 : vector<128x128xf32>
      %47 = arith.divf %45, %46 : vector<128x128xf32>
      %c0_28 = arith.constant 0 : index
      %c0_29 = arith.constant 0 : index
      %48 = vector.load %arg11[%c0_28, %c0_29] : memref<128x128xf32, #tpu.memory_space<vmem>>, vector<128x128xf32>
      %49 = arith.mulf %47, %48 : vector<128x128xf32>
      %50 = vector.shape_cast %49 : vector<128x128xf32> to vector<4x32x128xf32>
      %c0_30 = arith.constant 0 : index
      %c0_31 = arith.constant 0 : index
      %c0_32 = arith.constant 0 : index
      %51 = vector.load %arg9[%c0_30, %c0_31, %c0_32] : memref<4x32x128xf32, #tpu.memory_space<vmem>>, vector<4x32x128xf32>
      tpu.vector_store %arg9[%c0_30, %c0_31, %c0_32], %50 {strides = array<i32>} : memref<4x32x128xf32, #tpu.memory_space<vmem>>, vector<4x32x128xf32>,
    } else {
    }
    return
  }
  func.func @transform_0(%arg0: i32, %arg1: i32) -> (i32, i32, i32) {
    %c0_i32 = arith.constant 0 : i32
    %c0_i32_0 = arith.constant 0 : i32
    %c0_i32_1 = arith.constant 0 : i32
    return %arg0, %c0_i32, %c0_i32_0 : i32, i32, i32
  }
  func.func @transform_1(%arg0: i32, %arg1: i32) -> (i32, i32, i32) {
    %c0_i32 = arith.constant 0 : i32
    %c0_i32_0 = arith.constant 0 : i32
    %c0_i32_1 = arith.constant 0 : i32
    return %arg0, %c0_i32, %c0_i32_0 : i32, i32, i32
  }
  func.func @transform_2(%arg0: i32, %arg1: i32) -> (i32, i32) {
    %c0_i32 = arith.constant 0 : i32
    %c0_i32_0 = arith.constant 0 : i32
    %c0_i32_1 = arith.constant 0 : i32
    return %c0_i32, %c0_i32_0 : i32, i32
  }
  func.func @transform_3(%arg0: i32, %arg1: i32) -> (i32, i32) {
    %c0_i32 = arith.constant 0 : i32
    %c0_i32_0 = arith.constant 0 : i32
    %c0_i32_1 = arith.constant 0 : i32
    return %c0_i32, %c0_i32_0 : i32, i32
  }
  func.func @transform_4(%arg0: i32, %arg1: i32) -> (i32, i32) {
    %c0_i32 = arith.constant 0 : i32
    %c0_i32_0 = arith.constant 0 : i32
    return %c0_i32, %arg1 : i32, i32
  }
  func.func @transform_5(%arg0: i32, %arg1: i32) -> (i32, i32) {
    %c0_i32 = arith.constant 0 : i32
    %c0_i32_0 = arith.constant 0 : i32
    %c0_i32_1 = arith.constant 0 : i32
    return %c0_i32, %c0_i32_0 : i32, i32
  }
  func.func @transform_6(%arg0: i32, %arg1: i32) -> (i32, i32) {
    %c0_i32 = arith.constant 0 : i32
    %c0_i32_0 = arith.constant 0 : i32
    return %arg1, %c0_i32 : i32, i32
  }
  func.func @transform_7(%arg0: i32, %arg1: i32) -> (i32, i32, i32) {
    %c0_i32 = arith.constant 0 : i32
    %c0_i32_0 = arith.constant 0 : i32
    %c0_i32_1 = arith.constant 0 : i32
    return %arg0, %c0_i32, %c0_i32_0 : i32, i32, i32
  }
}

</mosaic_0001>

<bundles_post_ra>
// kernel: tpu_custom_call.1
= control target key start
LH: loop header
LB: loop body
LE: loop exit
PB: predicated region body
PF: predicated region fallthrough
CT: control target
= control target key end

     0   :  { %s4186_s0 = inlined_call_operand.hbm [shape: f32[8,32,128], index: 0, kind: input, shape index: {}]   ;;  %s4187_s1 = inlined_call_operand.hbm [shape: f32[8,1,128], index: 1, kind: input, shape index: {}]   ;;  %s4188_s2 = inlined_call_operand.vmem [shape: f32[1,128], index: 2, kind: input, shape index: {}]   ;;  %s4189_s3 = inlined_call_operand.vmem [shape: f32[1,128], index: 3, kind: input, shape index: {}]   ;;  %s4190_s4 = inlined_call_operand.hbm [shape: bf16[128,512], index: 4, kind: input, shape index: {}]   ;;  %s4191_s5 = inlined_call_operand.hbm [shape: bf16[128,128], index: 5, kind: input, shape index: {}]   ;;  %s4192_s6 = inlined_call_operand.hbm [shape: bf16[512,128], index: 6, kind: input, shape index: {}]   ;;  %s4193_s7 = inlined_call_operand.hbm [shape: f32[8,32,128], index: 7, kind: output, shape index: {}]  }
   0x1   :  { %4201 = sst [smem:[#allocation24_spill]] %s4186_s0 }
   0x2   :  { %4202 = sst [smem:[#allocation25_spill]] %s4190_s4 }
   0x3   :  { %4203 = sst [smem:[#allocation26_spill]] %s4191_s5 }
   0x4   :  { %4204 = sst [smem:[#allocation27_spill]] %s4192_s6 }
   0x5   :  { %12 = vsyncpa [#allocation5], 0 }
   0x6   :  { %14 = vsyncpa [#allocation5 + $0x1], 0 }
   0x7   :  { %15 = vsyncpa [#allocation8], 0 }
   0x8   :  { %17 = vsyncpa [#allocation8 + $0x1], 0 }
   0x9   :  { %18 = vsyncpa [#allocation11], 0 }
   0xa   :  { %19 = vsyncpa [#allocation6], 0 }
   0xb   :  { %21 = vsyncpa [#allocation6 + $0x1], 0  ;;  %s3425_s24 = smov 0   ;;  %s3427_s25 = smov 0  }
   0xc   :  { %s3429_s26 = smov 0   ;;  %s3431_s27 = smov 0  }
   0xd   :  { %s3433_s28 = smov 0   ;;  %s3435_s29 = smov 0  }
   0xe LB: > { %4205 = sst [smem:[#allocation19_spill]] %s3355_s26  ;;  %s3456_s30 = sadd.s32 4294967295, %s3367_s29   ;;  %s3367_s29 = sphi %s3435_s29, %s27_s29   ;;  %s3363_s28 = sphi %s3433_s28, %s4236_s28   ;;  %s3359_s27 = sphi %s3431_s27, %s4235_s27   ;;  %s3355_s26 = sphi %s3429_s26, %s4231_s26   ;;  %s3351_s25 = sphi %s3427_s25, %s4234_s25   ;;  %s3347_s24 = sphi %s3425_s24, %s4233_s24  }
   0xf   : > { %4206 = sst [smem:[#allocation20_spill]] %s3367_s29  ;;  %s2467_s8 = sadd.s32 4294967294, %s3367_s29  }
  0x10   : > { %p59_p0 = scmp.ne.s32.totalorder %s3351_s25, %s3347_s24  ;;  %p4194_p1 = scmp.eq.s32.totalorder %s3456_s30, 0 }
  0x11   : > { %p230_p3 = scmp.eq.s32.totalorder %s2467_s8, 1  ;;  %p2468_p5 = scmp.ge.s32.totalorder %s3367_s29, 1 }
  0x12   : > { %p3465_p4 = por %p4194_p1, %p59_p0  ;;  %p237_p7 = scmp.lt.s32.totalorder %s3367_s29, 3 }
  0x13   : > { %p3470_p6 = por %p230_p3, %p59_p0  ;;  %s3369_s12 = smov [#allocation9]  }
  0x14   : > { %p3475_p8 = pnand %p2468_p5, %p237_p7  ;;  %s258_s13 = sshll.u32 %s3369_s12, 4  ;;  %s259_s13 = int_to_ptr.vmem [resolvable:$true] %s258_s13 }
  0x15   : > { %s4208_s10 = scalar_select %p3470_p6, 1, 0 }
  0x16   : > { %p2891_p9 = pneg %p3475_p8  ;;  %s3370_s15 = smov [#allocation10]  }
  0x17   : > { %4209 = sst [smem:[#allocation21_spill]] %s4208_s10  ;;  %s271_s16 = sshll.u32 %s3370_s15, 4  ;;  %s272_s16 = int_to_ptr.vmem [resolvable:$true] %s271_s16 }
  0x18   : > { %p3484_p11 = pnand %p2891_p9, %p4194_p1  ;;  %s3152_s17 = scalar_lea.vmem %s259_s13, 4096 }
  0x19   : > { %p3153_p13 = scmp.ne.s32.totalorder %s259_s13, %s3152_s17  ;;  %p3160_p5 = scmp.lt.s32.totalorder %s259_s13, %s259_s13 }
  0x1a   : > { %p3143_p12 = pneg %p3484_p11  ;;  %p3161_p7 = scmp.lt.s32.totalorder %s3152_s17, %s3152_s17 }
  0x1c   : > { %p3155_p0 = pnand %p3153_p13, %p3143_p12  ;;  %p3162_p10 = por %p3161_p7, %p3160_p5 }
  0x1e   : > { %p3156_p3 = pneg %p3155_p0 }
  0x20   : > { %p3163_p9 = pnand %p3162_p10, %p3156_p3 }
  0x22   : > { %3166 = shalt.err (!%p3163_p9)
}
  0x23   : > { %s3371_s18 = smov 256   ;;  %s4195_s19 = smov 16  }
  0x24   : > { %s4212_s4 = sld [smem:[#allocation25_spill]]  ;;  %s3178_s22 = scalar_lea.vmem %s272_s16, 1024 }
  0x25   : > { %p3179_p1 = scmp.ne.s32.totalorder %s272_s16, %s3178_s22  ;;  %p3186_p2 = scmp.lt.s32.totalorder %s272_s16, %s272_s16 }
  0x26   : > { %p3187_p5 = scmp.lt.s32.totalorder %s3178_s22, %s3178_s22 }
  0x27   : > { %p3181_p13 = pnand %p3179_p1, %p3143_p12 }
  0x28   : > { %p3188_p10 = por %p3187_p5, %p3186_p2 }
  0x29   : > { %p3182_p0 = pneg %p3181_p13 }
  0x2a   : > { %2894 = dma.hbm_to_vmem [thread:$0]  (!%p3484_p11), %s4212_s4, 4096, %s259_s13, [#allocation8], %s3371_s18, %s3371_s18, %s4195_s19  }
  0x2b   : > { %p3189_p3 = pnand %p3188_p10, %p3182_p0 }
  0x2d   : > { %3192 = shalt.err (!%p3189_p3)
}
  0x2e   : > { %s3373_s23 = smov 64   ;;  %s3374_s8 = smov 4  }
  0x2f   : > { %s4213_s5 = sld [smem:[#allocation26_spill]]  ;;  %s3375_s13 = smov [#allocation12]  }
  0x30   : > { %s287_s17 = sshll.u32 %s3375_s13, 4  ;;  %s288_s17 = int_to_ptr.vmem [resolvable:$true] %s287_s17 }
  0x31   : > { %s3204_s18 = scalar_lea.vmem %s288_s17, 4096  ;;  %p3212_p9 = scmp.lt.s32.totalorder %s288_s17, %s288_s17 }
  0x32   : > { %p3205_p1 = scmp.ne.s32.totalorder %s288_s17, %s3204_s18  ;;  %p3213_p13 = scmp.lt.s32.totalorder %s3204_s18, %s3204_s18 }
  0x34   : > { %p3207_p7 = pnand %p3205_p1, %p3143_p12  ;;  %p3214_p0 = por %p3213_p13, %p3212_p9 }
  0x35   : > { %2897 = dma.hbm_to_vmem [thread:$0]  (!%p3484_p11), %s4213_s5, 1024, %s272_s16, [#allocation11], %s3373_s23, %s3373_s23, %s3374_s8  }
  0x36   : > { %p3208_p2 = pneg %p3207_p7 }
  0x38   : > { %p3215_p5 = pnand %p3214_p0, %p3208_p2 }
  0x3a   : > { %3218 = shalt.err (!%p3215_p5)
}
  0x3b   : > { %s4214_s6 = sld [smem:[#allocation27_spill]]  ;;  %s39_s16 = sadd.s32 1, %s3363_s28 }
  0x3c   : > { %p41_p12 = scmp.ge.s32.totalorder %s39_s16, 2  ;;  %s46_s22 = sadd.s32 1, %s3355_s26 }
  0x3d   : > { %p53_p10 = scmp.ne.s32.totalorder %s3355_s26, %s3351_s25  ;;  %p54_p3 = scmp.eq.s32.totalorder %s3367_s29, 0 }
  0x3e   : > { %s4238_s16 = smov (%p41_p12, %s39_s16), 0  ;;  %p4217_p7 = scmp.eq.s32.totalorder %s3456_s30, 1 }
  0x3f   : > { %4215 = sst [smem:[#allocation22_spill]] %s4238_s16  ;;  %p3522_p1 = por %p54_p3, %p53_p10 }
  0x40   : > { %p3528_p2 = por %p4217_p7, %p53_p10  ;;  %s4220_s0 = sld [smem:[#allocation24_spill]] }
  0x41   : > { %2900 = dma.hbm_to_vmem [thread:$0]  (!%p3484_p11), %s4214_s6, 4096, %s288_s17, [#allocation11], %s3373_s23, %s3373_s23, %s3374_s8  }
  0x42   : > { %s43_s23 = ssub.s32 %s3363_s28, %s4238_s16  ;;  %p2915_p11 = scmp.lt.s32.totalorder %s3367_s29, 2 }
  0x43   : > { %p44_p9 = scmp.eq.s32.totalorder %s43_s23, 0  ;;  %s3536_s8 = sand.u32 1, %s3355_s26  }
  0x44   : > { %s2473_s15 = sshll.u32 %s3536_s8, 7  ;;  %s2614_s17 = sshll.u32 %s3363_s28, 11 }
  0x45   : > { %s3540_s13 = scalar_select %p44_p9, %s3355_s26, %s46_s22  }
  0x46   : > { %s312_s21 = scalar_lea.hbm %s4220_s0, %s2614_s17  ;;  %s305_s19 = scalar_lea.vmem [#allocation4], %s2473_s15 }
  0x47   : > { %4219 = sst [smem:[#allocation23_spill]] %s3540_s13  ;;  %s313_s4 = sshll.u32 %s305_s19, 4  ;;  %s314_s4 = int_to_ptr.vmem [resolvable:$true] %s313_s4 }
  0x48   : > { %p3548_p13 = pnand %p2915_p11, %p3522_p1  ;;  %s323_s23 = sand.u32 1, %s3367_s29  }
  0x49   : > { %s302_s6 = scalar_lea.sflag [#allocation5], %s3536_s8  ;;  %s3232_s22 = scalar_lea.vmem %s314_s4, 2048 }
  0x4a   : > { %p3221_p0 = pneg %p3548_p13  ;;  %p3233_p5 = scmp.ne.s32.totalorder %s314_s4, %s3232_s22 }
  0x4b   : > { %s3376_s15 = smov [#allocation4]  }
  0x4c   : > { %p3235_p12 = pnand %p3233_p5, %p3221_p0  ;;  %s3237_s19 = sshll.u32 %s3376_s15, 4  ;;  %s3238_s19 = int_to_ptr.vmem [resolvable:$false] %s3237_s19 }
  0x4d   : > { %s3239_s14 = scalar_lea.vmem %s3238_s19, 4096  ;;  %p3240_p3 = scmp.lt.s32.totalorder %s314_s4, %s3238_s19 }
  0x4e   : > { %p3236_p10 = pneg %p3235_p12  ;;  %p3241_p1 = scmp.lt.s32.totalorder %s3239_s14, %s3232_s22 }
  0x50   : > { %p3242_p7 = por %p3241_p1, %p3240_p3 }
  0x52   : > { %p3243_p11 = pnand %p3242_p7, %p3236_p10 }
  0x54   : > { %3246 = shalt.err (!%p3243_p11)
}
  0x55   : > { %s3377_s17 = smov 128   ;;  %s3378_s18 = smov 8  }
  0x56   : > { %2904 = dma.hbm_to_vmem [thread:$0]  (!%p3548_p13), %s312_s21, 2048, %s314_s4, %s302_s6, %s3377_s17, %s3377_s17, %s3378_s18  }
  0x57   : > { %s2477_s20 = sshll.u32 %s3536_s8, 2  ;;  %s2615_s0 = sshll.u32 %s3363_s28, 6 }
  0x58   : > { %s333_s15 = scalar_lea.hbm %s4187_s1, %s2615_s0  ;;  %s327_s26 = scalar_lea.vmem [#allocation7], %s2477_s20 }
  0x59   : > { %s334_s19 = sshll.u32 %s327_s26, 4  ;;  %s324_s22 = scalar_lea.sflag [#allocation8], %s323_s23  ;;  %s335_s19 = int_to_ptr.vmem [resolvable:$true] %s334_s19 }
  0x5a   : > { %s3260_s14 = scalar_lea.vmem %s335_s19, 64  ;;  %s3379_s29 = smov [#allocation7]  }
  0x5b   : > { %p3261_p9 = scmp.ne.s32.totalorder %s335_s19, %s3260_s14  ;;  %s3265_s10 = sshll.u32 %s3379_s29, 4  ;;  %s3266_s10 = int_to_ptr.vmem [resolvable:$false] %s3265_s10 }
  0x5c   : > { %s3267_s4 = scalar_lea.vmem %s3266_s10, 128  ;;  %p3268_p10 = scmp.lt.s32.totalorder %s335_s19, %s3266_s10 }
  0x5d   : > { %p3263_p5 = pnand %p3261_p9, %p3221_p0  ;;  %p3269_p3 = scmp.lt.s32.totalorder %s3267_s4, %s3260_s14 }
  0x5f   : > { %p3264_p12 = pneg %p3263_p5  ;;  %p3270_p1 = por %p3269_p3, %p3268_p10 }
  0x61   : > { %p3271_p7 = pnand %p3270_p1, %p3264_p12 }
  0x63   : > { %3274 = shalt.err (!%p3271_p7)
}
  0x64   : > { %s3380_s0 = smov 1   ;;  %s4222_s6 = smov 16  }
  0x65   : > { %2907 = dma.hbm_to_vmem [thread:$0]  (!%p3548_p13), %s333_s15, 64, %s335_s19, %s324_s22, %s4222_s6, %s4222_s6, %s3380_s0  }
  0x66   : > { %346 = sbr.rel (%p3475_p8) target bundleno = 677 (0x2a5), region = 48  ;;  %s3576_s26 = sand.u32 (!%p3475_p8), 1, %s3351_s25  }
  0x67   : > { %s2481_s29 = sshll.u32 (!%p3475_p8), %s3576_s26, 7  ;;  %s349_s10 = scalar_lea.sflag (!%p3475_p8), [#allocation5], %s3576_s26 }
  0x68   : > { %s3582_s16 = scalar_lea.vmem (!%p3475_p8), [#allocation4], %s2481_s29 }
  0x6b   : > { %3326 = dma.done.wait (%p3465_p4), %s349_s10, 2048  }
  0x6c   : > { %3328 = vsyncadd (%p3465_p4), %s349_s10, 4294965248  ;;  %s357_s5 = sand.u32 1, %s3456_s30   ;;  %s2482_s11 = sshll.u32 %s3576_s26, 2 }
  0x6d   : > { %s358_s8 = scalar_lea.sflag [#allocation8], %s357_s5  ;;  %s3590_s13 = scalar_lea.vmem [#allocation7], %s2482_s11 }
  0x6e   : > { %3330 = dma.done.wait (%p3465_p4), %s358_s8, 64  }
  0x6f   : > { %3332 = vsyncadd (%p3465_p4), %s358_s8, 4294967232  ;;  %p4223_p8 = scmp.eq.s32.totalorder %s3456_s30, 0 }
  0x71   : > { %3334 = dma.done.wait (%p4223_p8), [#allocation8], 4096   ;;  %p4224_p13 = pmov %p4223_p8 }
  0x72   : > { %p4225_p0 = pmov %p4223_p8 }
  0x73   : > { %3336 = vsyncadd (%p4224_p13), [#allocation8], 4294963200 }
  0x74   : > { %3338 = dma.done.wait (%p4225_p0), [#allocation11], 5120   ;;  %p4226_p11 = pmov %p4225_p0 }
  0x75   : > { %v3381_v0 = vmov 0   ;;  %v2981_v1 = vld [vmem:[#allocation9 + $0xe4] ss:$16 sps:$4 sm:$0xff]   ;;  %v2983_v2 = vld [vmem:[#allocation9 + $0xec] ss:$16 sps:$4 sm:$0xff]   ;;  %v455_v18 = vlaneseq  ;;  %s4090_s17 = scalar_lea.vmem [#allocation13], %s2481_s29 }
  0x76   : > { %3340 = vsyncadd (%p4226_p11), [#allocation11], 4294962176  ;;  %975 = vmatprep.mubr.bf16.mxu0 %v3381_v0  ;;  %1088 = vmatprep.mubr.bf16.mxu1 %v3381_v0  ;;  %v2985_v3 = vld [vmem:[#allocation9 + $0xe0] ss:$16 sps:$4 sm:$0xff]   ;;  %v2986_v4 = vld [vmem:[#allocation9 + $0xe8] ss:$16 sps:$4 sm:$0xff]  }
  0x77   : > { %943 = vmatprep.subr.bf16.mxu0 %v2981_v1  ;;  %1056 = vmatprep.subr.bf16.mxu1 %v2983_v2  ;;  %v2987_v5 = vld [vmem:[#allocation9 + $0xc4] ss:$16 sps:$4 sm:$0xff]   ;;  %v2989_v6 = vld [vmem:[#allocation9 + $0xcc] ss:$16 sps:$4 sm:$0xff]   ;;  %v2991_v7 = vld [vmem:[#allocation9 + $0xc0] ss:$16 sps:$4 sm:$0xff]  }
  0x78   : > { %944 = vmatpush1.bf16.msra.mxu0 %v2985_v3  ;;  %1057 = vmatpush1.bf16.msra.mxu1 %v2986_v4  ;;  %v2992_v8 = vld [vmem:[#allocation9 + $0xc8] ss:$16 sps:$4 sm:$0xff]   ;;  %v2993_v9 = vld [vmem:[#allocation9 + $0xa4] ss:$16 sps:$4 sm:$0xff]   ;;  %v2995_v10 = vld [vmem:[#allocation9 + $0xac] ss:$16 sps:$4 sm:$0xff]  }
  0x79   : > { %945 = vmatprep.subr.bf16.mxu0 %v2987_v5  ;;  %1058 = vmatprep.subr.bf16.mxu1 %v2989_v6  ;;  %v2997_v11 = vld [vmem:[#allocation9 + $0xa0] ss:$16 sps:$4 sm:$0xff]   ;;  %v2998_v12 = vld [vmem:[#allocation9 + $0xa8] ss:$16 sps:$4 sm:$0xff]   ;;  %v2999_v13 = vld [vmem:[#allocation9 + $0x84] ss:$16 sps:$4 sm:$0xff]  }
  0x7a   : > { %v3001_v14 = vld [vmem:[#allocation9 + $0x8c] ss:$16 sps:$4 sm:$0xff]   ;;  %v3003_v15 = vld [vmem:[#allocation9 + $0x80] ss:$16 sps:$4 sm:$0xff]   ;;  %v3004_v16 = vld [vmem:[#allocation9 + $0x88] ss:$16 sps:$4 sm:$0xff]  }
  0x7b   : > { %v3005_v17 = vld [vmem:[#allocation9 + $0x64] ss:$16 sps:$4 sm:$0xff]   ;;  %v3007_v19 = vld [vmem:[#allocation9 + $0x6c] ss:$16 sps:$4 sm:$0xff]   ;;  %v3009_v20 = vld [vmem:[#allocation9 + $0x60] ss:$16 sps:$4 sm:$0xff]  }
  0x7c   : > { %946 = vmatpush1.bf16.msra.mxu0 %v2991_v7  ;;  %1059 = vmatpush1.bf16.msra.mxu1 %v2992_v8  ;;  %v3010_v21 = vld [vmem:[#allocation9 + $0x68] ss:$16 sps:$4 sm:$0xff]   ;;  %v3011_v22 = vld [vmem:[#allocation9 + $0x44] ss:$16 sps:$4 sm:$0xff]   ;;  %v3606_v23 = vshrl.u32 %v455_v18, 7  ;;  %s2633_s18 = sshll.u32 %s3359_s27, 11 }
  0x7d   : > { %947 = vmatprep.subr.bf16.mxu0 %v2993_v9  ;;  %1060 = vmatprep.subr.bf16.mxu1 %v2995_v10  ;;  %v3013_v24 = vld [vmem:[#allocation9 + $0x4c] ss:$16 sps:$4 sm:$0xff]   ;;  %v3015_v25 = vld [vmem:[#allocation9 + $0x40] ss:$16 sps:$4 sm:$0xff]   ;;  %v3016_v26 = vld [vmem:[#allocation9 + $0x48] ss:$16 sps:$4 sm:$0xff]   ;;  %s4133_s27 = scalar_lea.hbm %s4193_s7, %s2633_s18 }
  0x7e   : > { %v3017_v27 = vld [vmem:[#allocation9 + $0x24] ss:$16 sps:$4 sm:$0xff]   ;;  %v3609_v28 = vsub.s32 0, %v3606_v23  ;;  %v3019_v29 = vld [vmem:[#allocation9 + $0x2c] ss:$16 sps:$4 sm:$0xff]   ;;  %vm457_vm0 = vcmp.lt.s32.totalorder %v3606_v23, 1 }
  0x7f   : > { %v419_v30 = vld [vmem:[%s3582_s16] sm:$0xff]  ;;  %v420_v31 = vld [vmem:[%s3582_s16 + $0x8] sm:$0xff]  ;;  %vm477_vm1 = vcmp.eq.s32.totalorder %v3606_v23, 0  ;;  %v3616_v33 = vld [vmem:[%s3582_s16 + $0x78] sm:$0xff]  ;;  %s2330_s20 = sshll.u32 %s4090_s17, 4  ;;  %s2316_s22 = scalar_lea.sflag [#allocation6], %s3576_s26  ;;  %s4135_s20 = int_to_ptr.vmem [resolvable:$true] %s2330_s20 }
  0x80   : > { %948 = vmatpush1.bf16.msra.mxu0 %v2997_v11  ;;  %1061 = vmatpush1.bf16.msra.mxu1 %v2998_v12  ;;  %v3021_v32 = vld [vmem:[#allocation9 + $0x20] ss:$16 sps:$4 sm:$0xff]   ;;  %v439_v34 = vrot.slane %v419_v30, 7  ;;  %v440_v35 = vrot.slane %v420_v31, 7  ;;  %v421_v36 = vld [vmem:[%s3582_s16 + $0x10] sm:$0xff]  ;;  %v454_v38 = vrot.slane %v3616_v33, 7 }
  0x81   : > { %949 = vmatprep.subr.bf16.mxu0 %v2999_v13  ;;  %1062 = vmatprep.subr.bf16.mxu1 %v3001_v14  ;;  %v2487_v37 = vld [vmem:[%s3590_s13] ss:$0 sm:$0xff]  ;;  %v422_v40 = vld [vmem:[%s3582_s16 + $0x18] sm:$0xff]  ;;  %v441_v48 = vrot.slane %v421_v36, 7  ;;  %v424_v55 = vld [vmem:[%s3582_s16 + $0x28] sm:$0xff]  ;;  %s3275_s14 = scalar_lea.vmem %s4135_s20, 2048 }
  0x82   : > { %v529_v39 = vld [vmem:[%s4188_s2] sm:$0x1]  ;;  %v3023_v42 = vld [vmem:[#allocation9 + $0x4] ss:$16 sps:$4 sm:$0xff]   ;;  %v3025_v45 = vld [vmem:[#allocation9 + $0xc] ss:$16 sps:$4 sm:$0xff]   ;;  %v472_v46 = vsel %vm457_vm0, %v439_v34, %v440_v35  ;;  %v473_v47 = vsel %vm457_vm0, %v454_v38, %v439_v34  ;;  %p3276_p4 = scmp.ne.s32.totalorder %s4135_s20, %s3275_s14 }
  0x83   : > { %v3022_v41 = vld [vmem:[#allocation9 + $0x28] ss:$16 sps:$4 sm:$0xff]   ;;  %v3626_v43 = vrot.slane %v529_v39, %v3609_v28  ;;  %v552_v44 = vsub.f32 1.0, %v529_v39  ;;  %v442_v49 = vrot.slane %v422_v40, 7  ;;  %v513_v51 = vsel %vm477_vm1, %v2487_v37, %v473_v47  ;;  %v3027_v56 = vld [vmem:[#allocation9] ss:$16 sps:$4 sm:$0xff]  }
  0x84   : > { %950 = vmatpush1.bf16.msra.mxu0 %v3003_v15  ;;  %1063 = vmatpush1.bf16.msra.mxu1 %v3004_v16  ;;  %v423_v50 = vld [vmem:[%s3582_s16 + $0x20] sm:$0xff]  ;;  %v471_v59 = vsel %vm457_vm0, %v440_v35, %v441_v48  ;;  %v425_v3 = vld [vmem:[%s3582_s16 + $0x30] sm:$0xff]  ;;  %v426_v4 = vld [vmem:[%s3582_s16 + $0x38] sm:$0xff]  ;;  %v444_v7 = vrot.slane %v424_v55, 7  ;;  %p3277_p9 = pnand %p3276_p4, %p3528_p2  ;;  %s3382_s4 = smov [#allocation13]  }
  0x85   : > { %951 = vmatprep.subr.bf16.mxu0 %v3005_v17  ;;  %1064 = vmatprep.subr.bf16.mxu1 %v3007_v19  ;;  %v536_v52 = vmul.f32 %v3626_v43, %v419_v30  ;;  %v537_v53 = vmul.f32 %v3626_v43, %v420_v31  ;;  %v3640_v54 = vrot.slane %v552_v44, %v3609_v28  ;;  %v3028_v57 = vld [vmem:[#allocation9 + $0x8] ss:$16 sps:$4 sm:$0xff]   ;;  %v443_v2 = vrot.slane %v423_v50, 7  ;;  %v430_v44 = vld [vmem:[%s3582_s16 + $0x58] sm:$0xff]  ;;  %s3279_s0 = sshll.u32 %s3382_s4, 4  ;;  %s3280_s0 = int_to_ptr.vmem [resolvable:$false] %s3279_s0 }
  0x86   : > { %v470_v58 = vsel %vm457_vm0, %v441_v48, %v442_v49  ;;  %v538_v60 = vmul.f32 %v3626_v43, %v421_v36  ;;  %v2488_v61 = vld [vmem:[%s3590_s13 + $0x1] ss:$0 sm:$0xff]  ;;  %v539_v1 = vmul.f32 %v3626_v43, %v422_v40  ;;  %v540_v8 = vmul.f32 %v3626_v43, %v423_v50  ;;  %v429_v37 = vld [vmem:[%s3582_s16 + $0x50] sm:$0xff]  ;;  %p3278_p5 = pneg %p3277_p9  ;;  %s3281_s6 = scalar_lea.vmem %s3280_s0, 4096 }
  0x87   : > { %v559_v62 = vmul.f32 %v3640_v54, %v513_v51  ;;  %v560_v63 = vmul.f32 %v3640_v54, %v472_v46  ;;  %v561_v5 = vmul.f32 %v3640_v54, %v471_v59  ;;  %v562_v6 = vmul.f32 %v3640_v54, %v470_v58  ;;  %v3037_v9 = vld [vmem:[#allocation12 + $0x78] sm:$0xff]   ;;  %p3282_p12 = scmp.lt.s32.totalorder %s4135_s20, %s3280_s0  ;;  %p3283_p10 = scmp.lt.s32.totalorder %s3281_s6, %s3275_s14 }
  0x88   : > { %952 = vmatpush1.bf16.msra.mxu0 %v3009_v20  ;;  %1065 = vmatpush1.bf16.msra.mxu1 %v3010_v21  ;;  %v469_v12 = vsel %vm457_vm0, %v442_v49, %v443_v2  ;;  %v541_v13 = vmul.f32 %v3626_v43, %v424_v55  ;;  %v3038_v14 = vld [vmem:[#allocation12 + $0xf8] sm:$0xff]   ;;  %v468_v17 = vsel %vm457_vm0, %v443_v2, %v444_v7  ;;  %v432_v55 = vld [vmem:[%s3582_s16 + $0x68] sm:$0xff] }
  0x89   : > { %953 = vmatprep.subr.bf16.mxu0 %v3011_v22  ;;  %1066 = vmatprep.subr.bf16.mxu1 %v3013_v24  ;;  %v575_v10 = vadd.f32 %v559_v62, %v536_v52  ;;  %v576_v11 = vadd.f32 %v560_v63, %v537_v53  ;;  %v577_v15 = vadd.f32 %v561_v5, %v538_v60  ;;  %v427_v19 = vld [vmem:[%s3582_s16 + $0x40] sm:$0xff]  ;;  %v445_v24 = vrot.slane %v425_v3, 7  ;;  %p3284_p3 = por %p3283_p10, %p3282_p12 }
  0x8a   : > { %v578_v16 = vadd.f32 %v562_v6, %v539_v1  ;;  %v517_v18 = vsel %vm477_vm1, %v2488_v61, %v469_v12  ;;  %v564_v22 = vmul.f32 %v3640_v54, %v468_v17  ;;  %v542_v30 = vmul.f32 %v3626_v43, %v425_v3  ;;  %v431_v49 = vld [vmem:[%s3582_s16 + $0x60] sm:$0xff]  ;;  %v433_v61 = vld [vmem:[%s3582_s16 + $0x70] sm:$0xff] }
  0x8b   : > { %v2637_v20 = vpack.c.bf16 %v576_v11, %v575_v10  ;;  %v563_v21 = vmul.f32 %v3640_v54, %v517_v18  ;;  %v543_v31 = vmul.f32 %v3626_v43, %v426_v4  ;;  %v467_v35 = vsel %vm457_vm0, %v444_v7, %v445_v24  ;;  %v3039_v3 = vld [vmem:[#allocation12 + $0x38] sm:$0xff]   ;;  %v3041_v18 = vld [vmem:[#allocation12 + $0x70] sm:$0xff]   ;;  %p3285_p1 = pnand %p3284_p3, %p3278_p5 }
  0x8c   : > { %954 = vmatpush1.bf16.msra.mxu0 %v3015_v25  ;;  %1067 = vmatpush1.bf16.msra.mxu1 %v3016_v26  ;;  %v428_v25 = vld [vmem:[%s3582_s16 + $0x48] sm:$0xff]  ;;  %v2489_v26 = vld [vmem:[%s3590_s13 + $0x2] ss:$0 sm:$0xff]  ;;  %v580_v34 = vadd.f32 %v564_v22, %v541_v13  ;;  %v447_v36 = vrot.slane %v427_v19, 7  ;;  %v565_v40 = vmul.f32 %v3640_v54, %v467_v35  ;;  %v449_v53 = vrot.slane %v429_v37, 7  ;;  %v3044_v35 = vld [vmem:[#allocation12 + $0xb0] sm:$0xff]  }
  0x8d   : > { %955 = vmatprep.subr.bf16.mxu0 %v3017_v27  ;;  %1068 = vmatprep.subr.bf16.mxu1 %v3019_v29  ;;  %v2642_v27 = vpack.c.bf16 %v578_v16, %v577_v15  ;;  %v446_v29 = vrot.slane %v426_v4, 7  ;;  %2638 = vst [vmem:[#allocation2] sm:$0xff] %v2637_v20   ;;  %v545_v48 = vmul.f32 %v3626_v43, %v428_v25  ;;  %v450_v60 = vrot.slane %v430_v44, 7 }
  0x8e   : > { %v581_v50 = vadd.f32 %v565_v40, %v542_v30  ;;  %v546_v63 = vmul.f32 %v3626_v43, %v429_v37  ;;  %v547_v1 = vmul.f32 %v3626_v43, %v430_v44  ;;  %v451_v2 = vrot.slane %v431_v49, 7 }
  0x8f   : > { %2674 = vst [vmem:[#allocation2 + $0x8] sm:$0xff] %v2642_v27   ;;  %v466_v39 = vsel %vm457_vm0, %v445_v24, %v446_v29  ;;  %v465_v47 = vsel %vm457_vm0, %v446_v29, %v447_v36  ;;  %v462_v7 = vsel %vm457_vm0, %v449_v53, %v450_v60  ;;  %v452_v12 = vrot.slane %v432_v55, 7  ;;  %v3042_v24 = vld [vmem:[#allocation12 + $0xf0] sm:$0xff]  }
  0x90   : > { %956 = vmatpush1.bf16.msra.mxu0 %v3021_v32  ;;  %1069 = vmatpush1.bf16.msra.mxu1 %v3022_v41  ;;  %v579_v32 = vadd.f32 %v563_v21, %v540_v8  ;;  %v448_v41 = vrot.slane %v428_v25, 7  ;;  %v566_v46 = vmul.f32 %v3640_v54, %v466_v39  ;;  %v521_v52 = vsel %vm477_vm1, %v2489_v26, %v465_v47  ;;  %v3040_v8 = vld [vmem:[#allocation12 + $0xb8] sm:$0xff]   ;;  %v3043_v29 = vld [vmem:[#allocation12 + $0x30] sm:$0xff]   ;;  %v3047_v47 = vld [vmem:[#allocation12 + $0x28] sm:$0xff]  }
  0x91   : > { %957 = vmatprep.subr.bf16.mxu0 %v3023_v42  ;;  %1070 = vmatprep.subr.bf16.mxu1 %v3025_v45  ;;  %v544_v42 = vmul.f32 %v3626_v43, %v427_v19  ;;  %v567_v58 = vmul.f32 %v3640_v54, %v521_v52  ;;  %v570_v11 = vmul.f32 %v3640_v54, %v462_v7  ;;  %v453_v22 = vrot.slane %v433_v61, 7  ;;  %v3053_v52 = vld [vmem:[#allocation12 + $0x58] sm:$0xff]   ;;  %v3065_v7 = vld [vmem:[#allocation12 + $0x40] sm:$0xff]  }
  0x92   : > { %v2647_v45 = vpack.c.bf16 %v580_v34, %v579_v32  ;;  %v464_v51 = vsel %vm457_vm0, %v447_v36, %v448_v41  ;;  %v463_v62 = vsel %vm457_vm0, %v448_v41, %v449_v53  ;;  %v461_v13 = vsel %vm457_vm0, %v450_v60, %v451_v2  ;;  %v3045_v41 = vld [vmem:[#allocation12 + $0x68] sm:$0xff]   ;;  %v3054_v53 = vld [vmem:[#allocation12 + $0xd8] sm:$0xff]  }
  0x93   : > { %v568_v59 = vmul.f32 %v3640_v54, %v464_v51  ;;  %v583_v5 = vadd.f32 %v567_v58, %v544_v42  ;;  %v569_v10 = vmul.f32 %v3640_v54, %v463_v62  ;;  %v548_v16 = vmul.f32 %v3626_v43, %v431_v49  ;;  %v3051_v49 = vld [vmem:[#allocation12 + $0x20] sm:$0xff]   ;;  %v3058_v58 = vld [vmem:[#allocation12 + $0xd0] sm:$0xff]   ;;  %v3061_v62 = vld [vmem:[#allocation12 + $0x48] sm:$0xff]  }
  0x94   : > { %958 = vmatpush1.bf16.msra.mxu0 %v3027_v56  ;;  %1071 = vmatpush1.bf16.msra.mxu1 %v3028_v57  ;;  %v2490_v56 = vld [vmem:[%s3590_s13 + $0x3] ss:$0 sm:$0xff]  ;;  %2675 = vst [vmem:[#allocation2 + $0x10] sm:$0xff] %v2647_v45   ;;  %v582_v57 = vadd.f32 %v566_v46, %v543_v31  ;;  %v549_v17 = vmul.f32 %v3626_v43, %v432_v55  ;;  %v3052_v51 = vld [vmem:[#allocation12 + $0xa0] sm:$0xff]  }
  0x95   : > { %2681 = vmatprep.subr.bf16.mxu0 %v3037_v9  ;;  %2745 = vmatprep.subr.bf16.mxu1 %v3038_v14  ;;  %v584_v6 = vadd.f32 %v568_v59, %v545_v48  ;;  %v3029_v9 = vld [vmem:[#allocation2] sm:$0xff]   ;;  %v525_v15 = vsel %vm477_vm1, %v2490_v56, %v461_v13  ;;  %v585_v19 = vadd.f32 %v569_v10, %v546_v63  ;;  %v3049_v48 = vld [vmem:[#allocation12 + $0x60] sm:$0xff]   ;;  %v3059_v59 = vld [vmem:[#allocation12 + $0x10] sm:$0xff]  }
  0x96   : > { %v2652_v4 = vpack.c.bf16 %v582_v57, %v581_v50  ;;  %v586_v20 = vadd.f32 %v570_v11, %v547_v1  ;;  %v460_v21 = vsel %vm457_vm0, %v451_v2, %v452_v12  ;;  %v571_v25 = vmul.f32 %v3640_v54, %v525_v15  ;;  %v3030_v42 = vld [vmem:[#allocation2 + $0x8] sm:$0xff]   ;;  %v3055_v55 = vld [vmem:[#allocation12 + $0x18] sm:$0xff]   ;;  %v3057_v57 = vld [vmem:[#allocation12 + $0x50] sm:$0xff]  }
  0x97   : > { %v2657_v14 = vpack.c.bf16 %v584_v6, %v583_v5  ;;  %976 = vmatmul.mubr.bf16.vlgmr.msra.gmra.mxu0 %v3029_v9  ;;  %1089 = vmatmul.mubr.bf16.vlgmr.msra.gmra.mxu1 %v3029_v9  ;;  %v572_v26 = vmul.f32 %v3640_v54, %v460_v21  ;;  %v550_v27 = vmul.f32 %v3626_v43, %v433_v61  ;;  %v3056_v56 = vld [vmem:[#allocation12 + $0x98] sm:$0xff]   ;;  %v3060_v61 = vld [vmem:[#allocation12 + $0x90] sm:$0xff]   ;;  %v3062_v63 = vld [vmem:[#allocation12 + $0xc8] sm:$0xff]  }
  0x98   : > { %2676 = vst [vmem:[#allocation2 + $0x18] sm:$0xff] %v2652_v4   ;;  %985 = vmatprep.mubr.bf16.mxu0 %v3381_v0  ;;  %1098 = vmatprep.mubr.bf16.mxu1 %v3381_v0  ;;  %v2662_v30 = vpack.c.bf16 %v586_v20, %v585_v19  ;;  %v458_v31 = vsel %vm457_vm0, %v453_v22, %v454_v38  ;;  %v3046_v38 = vld [vmem:[#allocation12 + $0xe8] sm:$0xff]   ;;  %v3067_v9 = vld [vmem:[#allocation12] sm:$0xff]   ;;  %v3069_v11 = vld [vmem:[#allocation10 + $0x38] sm:$0xff]  }
  0x99   : > { %2677 = vst [vmem:[#allocation2 + $0x20] sm:$0xff] %v2657_v14   ;;  %v459_v32 = vsel %vm457_vm0, %v452_v12, %v453_v22  ;;  %v551_v34 = vmul.f32 %v3626_v43, %v3616_v33  ;;  %2682 = vmatpush3.bf16.msra.mxu0 %v3039_v3  ;;  %v587_v36 = vadd.f32 %v571_v25, %v548_v16  ;;  %v3048_v33 = vld [vmem:[#allocation12 + $0xa8] sm:$0xff]   ;;  %v3068_v10 = vld [vmem:[#allocation12 + $0x80] sm:$0xff]  }
  0x9a   : > { %v588_v37 = vadd.f32 %v572_v26, %v549_v17  ;;  %v573_v39 = vmul.f32 %v3640_v54, %v459_v32  ;;  %v574_v40 = vmul.f32 %v3640_v54, %v458_v31  ;;  %2746 = vmatpush3.bf16.msra.mxu1 %v3040_v8  ;;  %2678 = vst [vmem:[#allocation2 + $0x28] sm:$0xff] %v2662_v30   ;;  %v3050_v54 = vld [vmem:[#allocation12 + $0xe0] sm:$0xff]   ;;  %v3063_v1 = vld [vmem:[#allocation12 + $0x8] sm:$0xff]  }
  0x9b   : > { %2683 = vmatprep.subr.bf16.mxu0 %v3041_v18  ;;  %2747 = vmatprep.subr.bf16.mxu1 %v3042_v24  ;;  %v3031_v50 = vld [vmem:[#allocation2 + $0x10] sm:$0xff]   ;;  %v3066_v8 = vld [vmem:[#allocation12 + $0xc0] sm:$0xff]  }
  0x9c   : > { %v2667_v44 = vpack.c.bf16 %v588_v37, %v587_v36  ;;  %v589_v45 = vadd.f32 %v573_v39, %v550_v27  ;;  %v590_v46 = vadd.f32 %v574_v40, %v551_v34  ;;  %v3064_v2 = vld [vmem:[#allocation12 + $0x88] sm:$0xff]  }
  0x9d   : > { %2684 = vmatpush3.bf16.msra.mxu0 %v3043_v29 }
  0x9e   : > { %2679 = vst [vmem:[#allocation2 + $0x30] sm:$0xff] %v2667_v44   ;;  %v2672_v43 = vpack.c.bf16 %v590_v46, %v589_v45  ;;  %2748 = vmatpush3.bf16.msra.mxu1 %v3044_v35  ;;  %2685 = vmatprep.subr.bf16.mxu0 %v3045_v41 }
  0x9f   : > { %986 = vmatmul.mubr.bf16.gmra.mxu0 %v3030_v42  ;;  %1099 = vmatmul.mubr.bf16.gmra.mxu1 %v3030_v42  ;;  %v3032_v60 = vld [vmem:[#allocation2 + $0x18] sm:$0xff]  }
  0xa0   : > { %995 = vmatprep.mubr.bf16.mxu0 %v3381_v0  ;;  %1108 = vmatprep.mubr.bf16.mxu1 %v3381_v0  ;;  %2680 = vst [vmem:[#allocation2 + $0x38] sm:$0xff] %v2672_v43   ;;  %v3033_v3 = vld [vmem:[#allocation2 + $0x20] sm:$0xff]   ;;  %v3070_v43 = vld [vmem:[#allocation10 + $0x30] sm:$0xff]  }
  0xa1   : > { %2749 = vmatprep.subr.bf16.mxu1 %v3046_v38  ;;  %2686 = vmatpush3.bf16.msra.mxu0 %v3047_v47  ;;  %v3034_v4 = vld [vmem:[#allocation2 + $0x28] sm:$0xff]  }
  0xa2   : > { %2750 = vmatpush3.bf16.msra.mxu1 %v3048_v33  ;;  %2687 = vmatprep.subr.bf16.mxu0 %v3049_v48 }
  0xa3   : > { %2751 = vmatprep.subr.bf16.mxu1 %v3050_v54 }
  0xa5   : > { %2688 = vmatpush3.bf16.msra.mxu0 %v3051_v49  ;;  %v3035_v5 = vld [vmem:[#allocation2 + $0x30] sm:$0xff]  }
  0xa6   : > { %2752 = vmatpush3.bf16.msra.mxu1 %v3052_v51  ;;  %2689 = vmatprep.subr.bf16.mxu0 %v3053_v52 }
  0xa7   : > { %996 = vmatmul.mubr.bf16.gmra.mxu0 %v3031_v50  ;;  %1109 = vmatmul.mubr.bf16.gmra.mxu1 %v3031_v50  ;;  %v3036_v6 = vld [vmem:[#allocation2 + $0x38] sm:$0xff]  }
  0xa8   : > { %1005 = vmatprep.mubr.bf16.mxu0 %v3381_v0  ;;  %1118 = vmatprep.mubr.bf16.mxu1 %v3381_v0 }
  0xa9   : > { %2753 = vmatprep.subr.bf16.mxu1 %v3054_v53  ;;  %2690 = vmatpush3.bf16.msra.mxu0 %v3055_v55 }
  0xaa   : > { %2754 = vmatpush3.bf16.msra.mxu1 %v3056_v56  ;;  %2691 = vmatprep.subr.bf16.mxu0 %v3057_v57 }
  0xab   : > { %2755 = vmatprep.subr.bf16.mxu1 %v3058_v58  ;;  %v1940_v58 = vld [vmem:[%s4189_s3] sm:$0x1] }
  0xad   : > { %2692 = vmatpush3.bf16.msra.mxu0 %v3059_v59 }
  0xae   : > { %2756 = vmatpush3.bf16.msra.mxu1 %v3060_v61  ;;  %2693 = vmatprep.subr.bf16.mxu0 %v3061_v62 }
  0xaf   : > { %1006 = vmatmul.mubr.bf16.gmra.mxu0 %v3032_v60  ;;  %1119 = vmatmul.mubr.bf16.gmra.mxu1 %v3032_v60 }
  0xb0   : > { %1015 = vmatprep.mubr.bf16.mxu0 %v3381_v0  ;;  %1128 = vmatprep.mubr.bf16.mxu1 %v3381_v0 }
  0xb1   : > { %2757 = vmatprep.subr.bf16.mxu1 %v3062_v63  ;;  %2694 = vmatpush3.bf16.msra.mxu0 %v3063_v1  ;;  %v3071_v63 = vld [vmem:[#allocation10 + $0x28] sm:$0xff]  }
  0xb2   : > { %2758 = vmatpush3.bf16.msra.mxu1 %v3064_v2  ;;  %2695 = vmatprep.subr.bf16.mxu0 %v3065_v7 }
  0xb3   : > { %2759 = vmatprep.subr.bf16.mxu1 %v3066_v8 }
  0xb5   : > { %2696 = vmatpush3.bf16.msra.mxu0 %v3067_v9 }
  0xb6   : > { %2760 = vmatpush3.bf16.msra.mxu1 %v3068_v10  ;;  %2825 = vmatprep.subr.bf16.mxu0 %v3069_v11 }
  0xb7   : > { %1016 = vmatmul.mubr.bf16.gmra.mxu0 %v3033_v3  ;;  %1129 = vmatmul.mubr.bf16.gmra.mxu1 %v3033_v3 }
  0xb8   : > { %1025 = vmatprep.mubr.bf16.mxu0 %v3381_v0  ;;  %1138 = vmatprep.mubr.bf16.mxu1 %v3381_v0 }
  0xb9   : > { %2857 = vmatprep.subr.bf16.mxu1 %v3069_v11 }
  0xbf   : > { %1026 = vmatmul.mubr.bf16.gmra.mxu0 %v3034_v4  ;;  %1139 = vmatmul.mubr.bf16.gmra.mxu1 %v3034_v4 }
  0xc0   : > { %1035 = vmatprep.mubr.bf16.mxu0 %v3381_v0  ;;  %1148 = vmatprep.mubr.bf16.mxu1 %v3381_v0 }
  0xc7   : > { %1036 = vmatmul.mubr.bf16.gmra.mxu0 %v3035_v5  ;;  %1149 = vmatmul.mubr.bf16.gmra.mxu1 %v3035_v5  ;;  %v3744_v5 = vld [vmem:[%s3582_s16] sm:$0xff] }
  0xc8   : > { %1045 = vmatprep.mubr.bf16.mxu0 %v3381_v0  ;;  %1158 = vmatprep.mubr.bf16.mxu1 %v3381_v0 }
  0xcf   : > { %1046 = vmatmul.mubr.bf16.gmra.mxu0 %v3036_v6  ;;  %1159 = vmatmul.mubr.bf16.gmra.mxu1 %v3036_v6  ;;  %v3747_v6 = vld [vmem:[%s3582_s16 + $0x78] sm:$0xff] }
 0x157   : > { %v977_v12 = vpop.f32.mrf.mxu0  ;;  %v1090_v13 = vpop.f32.mrf.mxu1 }
 0x158   : > { %v1169_v21 = vmax.f32 %v977_v12, 0.0  ;;  %v1171_v22 = vmax.f32 %v1090_v13, 0.0 }
 0x159   : > { %v979_v14 = vpop.f32.mrf.mxu0  ;;  %v1092_v15 = vpop.f32.mrf.mxu1 }
 0x15a   : > { %v1170_v17 = vmax.f32 %v979_v14, 0.0  ;;  %v1172_v18 = vmax.f32 %v1092_v15, 0.0  ;;  %v1233_v39 = vmul.f32 %v1169_v21, %v1169_v21  ;;  %v1235_v40 = vmul.f32 %v1171_v22, %v1171_v22 }
 0x15b   : > { %v981_v16 = vpop.f32.mrf.mxu0  ;;  %v1094_v0 = vpop.f32.mrf.mxu1 }
 0x15c   : > { %v1173_v19 = vmax.f32 %v981_v16, 0.0  ;;  %v1175_v20 = vmax.f32 %v1094_v0, 0.0  ;;  %v1234_v34 = vmul.f32 %v1170_v17, %v1170_v17  ;;  %v1236_v35 = vmul.f32 %v1172_v18, %v1172_v18  ;;  %v3072_v17 = vld [vmem:[#allocation10 + $0x20] sm:$0xff]  }
 0x15d   : > { %v983_v24 = vpop.f32.mrf.mxu0  ;;  %v1096_v25 = vpop.f32.mrf.mxu1  ;;  %v1850_v18 = vrot.slane %v3744_v5, 7 }
 0x15e   : > { %v1174_v26 = vmax.f32 %v983_v24, 0.0  ;;  %v1176_v27 = vmax.f32 %v1096_v25, 0.0  ;;  %v1237_v29 = vmul.f32 %v1173_v19, %v1173_v19  ;;  %v1239_v30 = vmul.f32 %v1175_v20, %v1175_v20  ;;  %v3752_v25 = vld [vmem:[%s3582_s16 + $0x8] sm:$0xff] }
 0x15f   : > { %v987_v31 = vpop.f32.mrf.mxu0  ;;  %v1100_v32 = vpop.f32.mrf.mxu1  ;;  %v1865_v19 = vrot.slane %v3747_v6, 7 }
 0x160   : > { %v1238_v36 = vmul.f32 %v1174_v26, %v1174_v26  ;;  %v1240_v37 = vmul.f32 %v1176_v27, %v1176_v27  ;;  %v1297_v45 = vpack.c.bf16 %v1237_v29, %v1233_v39  ;;  %v1299_v46 = vpack.c.bf16 %v1239_v30, %v1235_v40 }
 0x161   : > { %v989_v41 = vpop.f32.mrf.mxu0  ;;  %v1102_v42 = vpop.f32.mrf.mxu1  ;;  %v1177_v51 = vmax.f32 %v987_v31, 0.0  ;;  %v1179_v52 = vmax.f32 %v1100_v32, 0.0  ;;  %v3757_v31 = vrot.slane %v1940_v58, %v3609_v28 }
 0x162   : > { %v1298_v38 = vpack.c.bf16 %v1238_v36, %v1234_v34  ;;  %v1300_v44 = vpack.c.bf16 %v1240_v37, %v1236_v35  ;;  %v1178_v48 = vmax.f32 %v989_v41, 0.0  ;;  %v1180_v54 = vmax.f32 %v1102_v42, 0.0  ;;  %v3763_v36 = vld [vmem:[%s3582_s16 + $0x40] sm:$0xff]  ;;  %v3766_v37 = vld [vmem:[%s3582_s16 + $0x48] sm:$0xff] }
 0x163   : > { %v991_v47 = vpop.f32.mrf.mxu0  ;;  %v1104_v33 = vpop.f32.mrf.mxu1  ;;  %v1241_v7 = vmul.f32 %v1177_v51, %v1177_v51  ;;  %v1243_v8 = vmul.f32 %v1179_v52, %v1179_v52 }
 0x164   : > { %v1181_v49 = vmax.f32 %v991_v47, 0.0  ;;  %v1183_v50 = vmax.f32 %v1104_v33, 0.0  ;;  %1633 = vmatprep.mubr.bf16.mxu0 %v1298_v38  ;;  %1730 = vmatprep.mubr.bf16.mxu1 %v1300_v44  ;;  %v1242_v1 = vmul.f32 %v1178_v48, %v1178_v48  ;;  %v1244_v2 = vmul.f32 %v1180_v54, %v1180_v54  ;;  %v3773_v38 = vld [vmem:[%s3582_s16 + $0x10] sm:$0xff]  ;;  %v2579_v48 = vld [vmem:[%s3590_s13] ss:$0 sm:$0xff]  ;;  %v3784_v54 = vld [vmem:[%s3582_s16 + $0x38] sm:$0xff] }
 0x165   : > { %v993_v53 = vpop.f32.mrf.mxu0  ;;  %v1106_v55 = vpop.f32.mrf.mxu1  ;;  %1634 = vmatmul.mubr.bf16.vlgmr.msra.gmra.mxu0 %v1297_v45  ;;  %1731 = vmatmul.mubr.bf16.vlgmr.msra.gmra.mxu1 %v1299_v46  ;;  %v1851_v44 = vrot.slane %v3752_v25, 7  ;;  %v1884_v45 = vsel %vm457_vm0, %v1865_v19, %v1850_v18 }
 0x166   : > { %v1182_v56 = vmax.f32 %v993_v53, 0.0  ;;  %v1184_v57 = vmax.f32 %v1106_v55, 0.0  ;;  %2826 = vmatpush3.bf16.msra.mxu0 %v3069_v11  ;;  %2865 = vmatpush3.bf16.msra.mxu1 %v3069_v11  ;;  %v1245_v59 = vmul.f32 %v1181_v49, %v1181_v49  ;;  %v1247_v60 = vmul.f32 %v1183_v50, %v1183_v50 }
 0x167   : > { %v3739_v61 = vpop.f32.mrf.mxu0  ;;  %v3741_v62 = vpop.f32.mrf.mxu1  ;;  %2827 = vmatprep.subr.bf16.mxu0 %v3070_v43  ;;  %2858 = vmatprep.subr.bf16.mxu1 %v3070_v43  ;;  %v1963_v11 = vsub.f32 1.0, %v1940_v58  ;;  %v1858_v53 = vrot.slane %v3763_v36, 7  ;;  %v1859_v55 = vrot.slane %v3766_v37, 7  ;;  %v1852_v58 = vrot.slane %v3773_v38, 7 }
 0x168   : > { %v1246_v3 = vmul.f32 %v1182_v56, %v1182_v56  ;;  %v1248_v4 = vmul.f32 %v1184_v57, %v1184_v57  ;;  %v1301_v14 = vpack.c.bf16 %v1245_v59, %v1241_v7  ;;  %v1303_v15 = vpack.c.bf16 %v1247_v60, %v1243_v8 }
 0x169   : > { %v999_v9 = vpop.f32.mrf.mxu0  ;;  %v1112_v10 = vpop.f32.mrf.mxu1  ;;  %v1185_v26 = vmax.f32 %v3739_v61, 0.0  ;;  %v1187_v27 = vmax.f32 %v3741_v62, 0.0  ;;  %v3760_v32 = vrot.slane %v1963_v11, %v3609_v28  ;;  %v3073_v28 = vld [vmem:[#allocation10 + $0x18] sm:$0xff]   ;;  %v3791_v59 = vmul.f32 %v3757_v31, %v3744_v5 }
 0x16a   : > { %v1302_v12 = vpack.c.bf16 %v1246_v3, %v1242_v1  ;;  %v1304_v13 = vpack.c.bf16 %v1248_v4, %v1244_v2  ;;  %2828 = vmatpush3.bf16.msra.mxu0 %v3070_v43  ;;  %2866 = vmatpush3.bf16.msra.mxu1 %v3070_v43  ;;  %v1186_v20 = vmax.f32 %v999_v9, 0.0  ;;  %v1188_v21 = vmax.f32 %v1112_v10, 0.0  ;;  %v3074_v1 = vld [vmem:[#allocation10 + $0x10] sm:$0xff]   ;;  %v3797_v10 = vld [vmem:[%s3582_s16 + $0x50] sm:$0xff] }
 0x16b   : > { %v1001_v16 = vpop.f32.mrf.mxu0  ;;  %v1114_v0 = vpop.f32.mrf.mxu1  ;;  %2829 = vmatprep.subr.bf16.mxu0 %v3071_v63  ;;  %2859 = vmatprep.subr.bf16.mxu1 %v3071_v63  ;;  %v1249_v49 = vmul.f32 %v1185_v26, %v1185_v26  ;;  %v1251_v50 = vmul.f32 %v1187_v27, %v1187_v27  ;;  %v1924_v2 = vsel %vm477_vm1, %v2579_v48, %v1884_v45  ;;  %v1857_v3 = vrot.slane %v3784_v54, 7 }
 0x16c   : > { %v1189_v22 = vmax.f32 %v1001_v16, 0.0  ;;  %v1191_v24 = vmax.f32 %v1114_v0, 0.0  ;;  %1641 = vmatprep.mubr.bf16.mxu0 %v1302_v12  ;;  %1738 = vmatprep.mubr.bf16.mxu1 %v1304_v13  ;;  %v1250_v46 = vmul.f32 %v1186_v20, %v1186_v20  ;;  %v1252_v47 = vmul.f32 %v1188_v21, %v1188_v21 }
 0x16d   : > { %v1003_v29 = vpop.f32.mrf.mxu0  ;;  %v1116_v30 = vpop.f32.mrf.mxu1  ;;  %1642 = vmatmul.mubr.bf16.gmra.mxu0 %v1301_v14  ;;  %1739 = vmatmul.mubr.bf16.gmra.mxu1 %v1303_v15  ;;  %v1883_v15 = vsel %vm457_vm0, %v1850_v18, %v1851_v44  ;;  %v1948_v16 = vmul.f32 %v3757_v31, %v3752_v25  ;;  %v1882_v20 = vsel %vm457_vm0, %v1851_v44, %v1852_v58  ;;  %v3075_v25 = vld [vmem:[#allocation10 + $0x8] sm:$0xff]   ;;  %v1860_v27 = vrot.slane %v3797_v10, 7 }
 0x16e   : > { %v1190_v34 = vmax.f32 %v1003_v29, 0.0  ;;  %v1192_v35 = vmax.f32 %v1116_v30, 0.0  ;;  %2830 = vmatpush3.bf16.msra.mxu0 %v3071_v63  ;;  %2867 = vmatpush3.bf16.msra.mxu1 %v3071_v63  ;;  %v1253_v39 = vmul.f32 %v1189_v22, %v1189_v22  ;;  %v1255_v40 = vmul.f32 %v1191_v24, %v1191_v24 }
 0x16f   : > { %v3768_v41 = vpop.f32.mrf.mxu0  ;;  %v3770_v42 = vpop.f32.mrf.mxu1  ;;  %2831 = vmatprep.subr.bf16.mxu0 %v3072_v17  ;;  %2860 = vmatprep.subr.bf16.mxu1 %v3072_v17  ;;  %v3815_v5 = vsel %vm457_vm0, %v1858_v53, %v1859_v55  ;;  %v1970_v26 = vmul.f32 %v3760_v32, %v1924_v2  ;;  %v1876_v44 = vsel %vm457_vm0, %v1857_v3, %v1858_v53 }
 0x170   : > { %v1254_v33 = vmul.f32 %v1190_v34, %v1190_v34  ;;  %v1256_v43 = vmul.f32 %v1192_v35, %v1192_v35  ;;  %v1305_v60 = vpack.c.bf16 %v1253_v39, %v1249_v49  ;;  %v1307_v61 = vpack.c.bf16 %v1255_v40, %v1251_v50 }
 0x171   : > { %v1009_v51 = vpop.f32.mrf.mxu0  ;;  %v1122_v52 = vpop.f32.mrf.mxu1  ;;  %v1193_v11 = vmax.f32 %v3768_v41, 0.0  ;;  %v1195_v12 = vmax.f32 %v3770_v42, 0.0 }
 0x172   : > { %v1306_v56 = vpack.c.bf16 %v1254_v33, %v1250_v46  ;;  %v1308_v57 = vpack.c.bf16 %v1256_v43, %v1252_v47  ;;  %2832 = vmatpush3.bf16.msra.mxu0 %v3072_v17  ;;  %2868 = vmatpush3.bf16.msra.mxu1 %v3072_v17  ;;  %v1194_v4 = vmax.f32 %v1009_v51, 0.0  ;;  %v1196_v7 = vmax.f32 %v1122_v52, 0.0  ;;  %v2581_v33 = vld [vmem:[%s3590_s13 + $0x2] ss:$0 sm:$0xff]  ;;  %v3076_v51 = vld [vmem:[#allocation10] sm:$0xff]  }
 0x173   : > { %v1011_v62 = vpop.f32.mrf.mxu0  ;;  %v1124_v63 = vpop.f32.mrf.mxu1  ;;  %2833 = vmatprep.subr.bf16.mxu0 %v3073_v28  ;;  %2861 = vmatprep.subr.bf16.mxu1 %v3073_v28  ;;  %v1257_v39 = vmul.f32 %v1193_v11, %v1193_v11  ;;  %v1259_v40 = vmul.f32 %v1195_v12, %v1195_v12  ;;  %v3829_v47 = vmul.f32 %v3760_v32, %v1882_v20 }
 0x174   : > { %v1197_v8 = vmax.f32 %v1011_v62, 0.0  ;;  %v1199_v9 = vmax.f32 %v1124_v63, 0.0  ;;  %1649 = vmatprep.mubr.bf16.mxu0 %v1306_v56  ;;  %1746 = vmatprep.mubr.bf16.mxu1 %v1308_v57  ;;  %v1258_v29 = vmul.f32 %v1194_v4, %v1194_v4  ;;  %v1260_v30 = vmul.f32 %v1196_v7, %v1196_v7 }
 0x175   : > { %v1013_v13 = vpop.f32.mrf.mxu0  ;;  %v1126_v14 = vpop.f32.mrf.mxu1  ;;  %1650 = vmatmul.mubr.bf16.gmra.mxu0 %v1305_v60  ;;  %1747 = vmatmul.mubr.bf16.gmra.mxu1 %v1307_v61  ;;  %v1874_v52 = vsel %vm457_vm0, %v1859_v55, %v1860_v27  ;;  %v1932_v2 = vsel %vm477_vm1, %v2581_v33, %v1876_v44  ;;  %v1955_v55 = vmul.f32 %v3757_v31, %v3763_v36 }
 0x176   : > { %v1198_v0 = vmax.f32 %v1013_v13, 0.0  ;;  %v1200_v17 = vmax.f32 %v1126_v14, 0.0  ;;  %2834 = vmatpush3.bf16.msra.mxu0 %v3073_v28  ;;  %2869 = vmatpush3.bf16.msra.mxu1 %v3073_v28  ;;  %v1261_v21 = vmul.f32 %v1197_v8, %v1197_v8  ;;  %v1263_v18 = vmul.f32 %v1199_v9, %v1199_v9 }
 0x177   : > { %v3817_v22 = vpop.f32.mrf.mxu0  ;;  %v3819_v24 = vpop.f32.mrf.mxu1  ;;  %2835 = vmatprep.subr.bf16.mxu0 %v3074_v1  ;;  %2862 = vmatprep.subr.bf16.mxu1 %v3074_v1  ;;  %v1971_v28 = vmul.f32 %v3760_v32, %v1883_v15  ;;  %v3845_v8 = vadd.f32 %v1970_v26, %v3791_v59  ;;  %v1956_v15 = vmul.f32 %v3757_v31, %v3766_v37 }
 0x178   : > { %v1262_v34 = vmul.f32 %v1198_v0, %v1198_v0  ;;  %v1264_v35 = vmul.f32 %v1200_v17, %v1200_v17  ;;  %v1309_v43 = vpack.c.bf16 %v1261_v21, %v1257_v39  ;;  %v1311_v48 = vpack.c.bf16 %v1263_v18, %v1259_v40  ;;  %v3852_v21 = vld [vmem:[%s3582_s16 + $0x18] sm:$0xff] }
 0x179   : > { %v1019_v41 = vpop.f32.mrf.mxu0  ;;  %v1132_v42 = vpop.f32.mrf.mxu1  ;;  %v1201_v61 = vmax.f32 %v3817_v22, 0.0  ;;  %v1203_v62 = vmax.f32 %v3819_v24, 0.0  ;;  %v3847_v9 = vadd.f32 %v1971_v28, %v1948_v16  ;;  %v1978_v24 = vmul.f32 %v3760_v32, %v1932_v2 }
 0x17a   : > { %v1310_v45 = vpack.c.bf16 %v1262_v34, %v1258_v29  ;;  %v1312_v46 = vpack.c.bf16 %v1264_v35, %v1260_v30  ;;  %2836 = vmatpush3.bf16.msra.mxu0 %v3074_v1  ;;  %2870 = vmatpush3.bf16.msra.mxu1 %v3074_v1  ;;  %v1202_v53 = vmax.f32 %v1019_v41, 0.0  ;;  %v1204_v56 = vmax.f32 %v1132_v42, 0.0  ;;  %v3864_v42 = vld [vmem:[%s3582_s16 + $0x58] sm:$0xff] }
 0x17b   : > { %v1021_v49 = vpop.f32.mrf.mxu0  ;;  %v1134_v50 = vpop.f32.mrf.mxu1  ;;  %2837 = vmatprep.subr.bf16.mxu0 %v3075_v25  ;;  %2863 = vmatprep.subr.bf16.mxu1 %v3075_v25  ;;  %v1265_v18 = vmul.f32 %v1201_v61, %v1201_v61  ;;  %v1267_v59 = vmul.f32 %v1203_v62, %v1203_v62  ;;  %v3858_v37 = vmul.f32 %v3760_v32, %v1874_v52  ;;  %v1853_v40 = vrot.slane %v3852_v21, 7 }
 0x17c   : > { %v1205_v57 = vmax.f32 %v1021_v49, 0.0  ;;  %v1207_v60 = vmax.f32 %v1134_v50, 0.0  ;;  %1657 = vmatprep.mubr.bf16.mxu0 %v1310_v45  ;;  %1754 = vmatprep.mubr.bf16.mxu1 %v1312_v46  ;;  %v1266_v36 = vmul.f32 %v1202_v53, %v1202_v53  ;;  %v1268_v0 = vmul.f32 %v1204_v56, %v1204_v56 }
 0x17d   : > { %v1023_v63 = vpop.f32.mrf.mxu0  ;;  %v1136_v1 = vpop.f32.mrf.mxu1  ;;  %1658 = vmatmul.mubr.bf16.gmra.mxu0 %v1309_v43  ;;  %1755 = vmatmul.mubr.bf16.gmra.mxu1 %v1311_v48  ;;  %v1949_v41 = vmul.f32 %v3757_v31, %v3773_v38  ;;  %v2002_v49 = vpack.c.bf16 %v3847_v9, %v3845_v8  ;;  %v3868_v50 = vadd.f32 %v1978_v24, %v1955_v55  ;;  %v1861_v56 = vrot.slane %v3864_v42, 7 }
 0x17e   : > { %v1206_v4 = vmax.f32 %v1023_v63, 0.0  ;;  %v1208_v7 = vmax.f32 %v1136_v1, 0.0  ;;  %2838 = vmatpush3.bf16.msra.mxu0 %v3075_v25  ;;  %2871 = vmatpush3.bf16.msra.mxu1 %v3075_v25  ;;  %v1269_v11 = vmul.f32 %v1205_v57, %v1205_v57  ;;  %v1271_v12 = vmul.f32 %v1207_v60, %v1207_v60 }
 0x17f   : > { %v1027_v13 = vpop.f32.mrf.mxu0  ;;  %v1140_v14 = vpop.f32.mrf.mxu1  ;;  %2839 = vmatprep.subr.bf16.mxu0 %v3076_v51  ;;  %2864 = vmatprep.subr.bf16.mxu1 %v3076_v51  ;;  %v1979_v25 = vmul.f32 %v3760_v32, %v3815_v5  ;;  %v3872_v53 = vmul.f32 %v3757_v31, %v3852_v21  ;;  %v1881_v1 = vsel %vm457_vm0, %v1852_v58, %v1853_v40 }
 0x180   : > { %v1270_v17 = vmul.f32 %v1206_v4, %v1206_v4  ;;  %v1272_v20 = vmul.f32 %v1208_v7, %v1208_v7  ;;  %v1313_v30 = vpack.c.bf16 %v1269_v11, %v1265_v18  ;;  %v1315_v34 = vpack.c.bf16 %v1271_v12, %v1267_v59  ;;  %v1834_v11 = vld [vmem:[%s3582_s16 + $0x20] sm:$0xff]  ;;  %v3902_v59 = vld [vmem:[%s3582_s16 + $0x28] sm:$0xff] }
 0x181   : > { %v1029_v16 = vpop.f32.mrf.mxu0  ;;  %v1142_v22 = vpop.f32.mrf.mxu1  ;;  %v1209_v46 = vmax.f32 %v1027_v13, 0.0  ;;  %v1211_v33 = vmax.f32 %v1140_v14, 0.0  ;;  %v3875_v63 = vadd.f32 %v1979_v25, %v1956_v15  ;;  %v3885_v12 = vld [vmem:[%s3582_s16 + $0x60] sm:$0xff]  ;;  %v3892_v38 = vmul.f32 %v3757_v31, %v3797_v10 }
 0x182   : > { %v1314_v26 = vpack.c.bf16 %v1270_v17, %v1266_v36  ;;  %v1316_v29 = vpack.c.bf16 %v1272_v20, %v1268_v0  ;;  %2840 = vmatpush3.bf16.msra.mxu0 %v3076_v51  ;;  %2872 = vmatpush3.bf16.msra.mxu1 %v3076_v51  ;;  %v1210_v28 = vmax.f32 %v1029_v16, 0.0  ;;  %v1212_v5 = vmax.f32 %v1142_v22, 0.0 }
 0x183   : > { %v1031_v35 = vpop.f32.mrf.mxu0  ;;  %v1144_v39 = vpop.f32.mrf.mxu1  ;;  %v1273_v13 = vmul.f32 %v1209_v46, %v1209_v46  ;;  %v1275_v14 = vmul.f32 %v1211_v33, %v1211_v33  ;;  %v3888_v0 = vadd.f32 %v3829_v47, %v1949_v41  ;;  %v3895_v20 = vmul.f32 %v3760_v32, %v1881_v1 }
 0x184   : > { %v1213_v44 = vmax.f32 %v1031_v35, 0.0  ;;  %v1215_v45 = vmax.f32 %v1144_v39, 0.0  ;;  %1665 = vmatprep.mubr.bf16.mxu0 %v1314_v26  ;;  %1762 = vmatprep.mubr.bf16.mxu1 %v1316_v29  ;;  %v1274_v2 = vmul.f32 %v1210_v28, %v1210_v28  ;;  %v1276_v55 = vmul.f32 %v1212_v5, %v1212_v5 }
 0x185   : > { %v1033_v43 = vpop.f32.mrf.mxu0  ;;  %v1146_v48 = vpop.f32.mrf.mxu1  ;;  %1666 = vmatmul.mubr.bf16.gmra.mxu0 %v1313_v30  ;;  %1763 = vmatmul.mubr.bf16.gmra.mxu1 %v1315_v34  ;;  %v1873_v18 = vsel %vm457_vm0, %v1860_v27, %v1861_v56  ;;  %v1854_v25 = vrot.slane %v1834_v11, 7  ;;  %v1862_v26 = vrot.slane %v3885_v12, 7  ;;  %v3907_v28 = vmul.f32 %v3757_v31, %v3864_v42 }
 0x186   : > { %v1214_v51 = vmax.f32 %v1033_v43, 0.0  ;;  %v1216_v52 = vmax.f32 %v1146_v48, 0.0  ;;  %v1277_v57 = vmul.f32 %v1213_v44, %v1213_v44  ;;  %v1279_v60 = vmul.f32 %v1215_v45, %v1215_v45 }
 0x187   : > { %v1037_v61 = vpop.f32.mrf.mxu0  ;;  %v1150_v62 = vpop.f32.mrf.mxu1  ;;  %v1855_v5 = vrot.slane %v3902_v59, 7  ;;  %v2006_v46 = vpack.c.bf16 %v3875_v63, %v3868_v50  ;;  %v3913_v33 = vmul.f32 %v3760_v32, %v1873_v18  ;;  %v1880_v42 = vsel %vm457_vm0, %v1853_v40, %v1854_v25 }
 0x188   : > { %v1278_v4 = vmul.f32 %v1214_v51, %v1214_v51  ;;  %v1280_v7 = vmul.f32 %v1216_v52, %v1216_v52  ;;  %v1317_v16 = vpack.c.bf16 %v1277_v57, %v1273_v13  ;;  %v1319_v22 = vpack.c.bf16 %v1279_v60, %v1275_v14  ;;  %v2580_v57 = vld [vmem:[%s3590_s13 + $0x1] ss:$0 sm:$0xff]  ;;  %v3921_v60 = vld [vmem:[%s3582_s16 + $0x68] sm:$0xff] }
 0x189   : > { %v1039_v36 = vpop.f32.mrf.mxu0  ;;  %v1152_v15 = vpop.f32.mrf.mxu1  ;;  %v1217_v39 = vmax.f32 %v1037_v61, 0.0  ;;  %v1219_v10 = vmax.f32 %v1150_v62, 0.0  ;;  %v1872_v61 = vsel %vm457_vm0, %v1861_v56, %v1862_v26  ;;  %v1879_v21 = vsel %vm457_vm0, %v1854_v25, %v1855_v5 }
 0x18a   : > { %v1318_v58 = vpack.c.bf16 %v1278_v4, %v1274_v2  ;;  %v1320_v17 = vpack.c.bf16 %v1280_v7, %v1276_v55  ;;  %v1218_v29 = vmax.f32 %v1039_v36, 0.0  ;;  %v1220_v30 = vmax.f32 %v1152_v15, 0.0  ;;  %v2582_v4 = vld [vmem:[%s3590_s13 + $0x3] ss:$0 sm:$0xff] }
 0x18b   : > { %v1041_v47 = vpop.f32.mrf.mxu0  ;;  %v1154_v24 = vpop.f32.mrf.mxu1  ;;  %v1281_v7 = vmul.f32 %v1217_v39, %v1217_v39  ;;  %v1283_v13 = vmul.f32 %v1219_v10, %v1219_v10  ;;  %v1951_v40 = vmul.f32 %v3757_v31, %v1834_v11  ;;  %v1928_v56 = vsel %vm477_vm1, %v2580_v57, %v1880_v42 }
 0x18c   : > { %v1221_v34 = vmax.f32 %v1041_v47, 0.0  ;;  %v1223_v35 = vmax.f32 %v1154_v24, 0.0  ;;  %1673 = vmatprep.mubr.bf16.mxu0 %v1318_v58  ;;  %1770 = vmatprep.mubr.bf16.mxu1 %v1320_v17  ;;  %v1282_v62 = vmul.f32 %v1218_v29, %v1218_v29  ;;  %v1284_v1 = vmul.f32 %v1220_v30, %v1220_v30 }
 0x18d   : > { %v1043_v41 = vpop.f32.mrf.mxu0  ;;  %v1156_v27 = vpop.f32.mrf.mxu1  ;;  %1674 = vmatmul.mubr.bf16.gmra.mxu0 %v1317_v16  ;;  %1771 = vmatmul.mubr.bf16.gmra.mxu1 %v1319_v22  ;;  %v1863_v17 = vrot.slane %v3921_v60, 7  ;;  %v1952_v24 = vmul.f32 %v3757_v31, %v3902_v59  ;;  %v1936_v29 = vsel %vm477_vm1, %v2582_v4, %v1872_v61  ;;  %v1960_v61 = vmul.f32 %v3757_v31, %v3921_v60 }
 0x18e   : > { %v1222_v44 = vmax.f32 %v1043_v41, 0.0  ;;  %v1224_v45 = vmax.f32 %v1156_v27, 0.0  ;;  %v1285_v43 = vmul.f32 %v1221_v34, %v1221_v34  ;;  %v1287_v48 = vmul.f32 %v1223_v35, %v1223_v35 }
 0x18f   : > { %v1047_v51 = vpop.f32.mrf.mxu0  ;;  %v1160_v52 = vpop.f32.mrf.mxu1  ;;  %v1974_v27 = vmul.f32 %v3760_v32, %v1928_v56  ;;  %v1954_v50 = vmul.f32 %v3757_v31, %v3784_v54 }
 0x190   : > { %v1286_v2 = vmul.f32 %v1222_v44, %v1222_v44  ;;  %v1288_v55 = vmul.f32 %v1224_v45, %v1224_v45  ;;  %v1321_v18 = vpack.c.bf16 %v1285_v43, %v1281_v7  ;;  %v1323_v16 = vpack.c.bf16 %v1287_v48, %v1283_v13 }
 0x191   : > { %v1049_v14 = vpop.f32.mrf.mxu0  ;;  %v1162_v36 = vpop.f32.mrf.mxu1  ;;  %v1225_v35 = vmax.f32 %v1047_v51, 0.0  ;;  %v1227_v39 = vmax.f32 %v1160_v52, 0.0  ;;  %v1975_v44 = vmul.f32 %v3760_v32, %v1879_v21  ;;  %v1871_v48 = vsel %vm457_vm0, %v1862_v26, %v1863_v17  ;;  %v1836_v52 = vld [vmem:[%s3582_s16 + $0x30] sm:$0xff] }
 0x192   : > { %v1322_v15 = vpack.c.bf16 %v1286_v2, %v1282_v62  ;;  %v1324_v58 = vpack.c.bf16 %v1288_v55, %v1284_v1  ;;  %v1226_v25 = vmax.f32 %v1049_v14, 0.0  ;;  %v1228_v30 = vmax.f32 %v1162_v36, 0.0  ;;  %v1844_v1 = vld [vmem:[%s3582_s16 + $0x70] sm:$0xff] }
 0x193   : > { %v1051_v22 = vpop.f32.mrf.mxu0  ;;  %v1164_v47 = vpop.f32.mrf.mxu1  ;;  %v1959_v51 = vmul.f32 %v3757_v31, %v3885_v12  ;;  %v1982_v62 = vmul.f32 %v3760_v32, %v1936_v29  ;;  %v1289_v13 = vmul.f32 %v1225_v35, %v1225_v35  ;;  %v1291_v14 = vmul.f32 %v1227_v39, %v1227_v39 }
 0x194   : > { %v1229_v11 = vmax.f32 %v1051_v22, 0.0  ;;  %v1231_v34 = vmax.f32 %v1164_v47, 0.0  ;;  %1681 = vmatprep.mubr.bf16.mxu0 %v1322_v15  ;;  %1778 = vmatprep.mubr.bf16.mxu1 %v1324_v58  ;;  %v1290_v2 = vmul.f32 %v1226_v25, %v1226_v25  ;;  %v1292_v55 = vmul.f32 %v1228_v30, %v1228_v30 }
 0x195   : > { %v1053_v10 = vpop.f32.mrf.mxu0  ;;  %v1166_v41 = vpop.f32.mrf.mxu1  ;;  %1682 = vmatmul.mubr.bf16.gmra.mxu0 %v1321_v18  ;;  %1779 = vmatmul.mubr.bf16.gmra.mxu1 %v1323_v16  ;;  %v1983_v26 = vmul.f32 %v3760_v32, %v1871_v48  ;;  %v1856_v36 = vrot.slane %v1836_v52, 7  ;;  %v1996_v15 = vadd.f32 %v3858_v37, %v3892_v38  ;;  %v1864_v58 = vrot.slane %v1844_v1, 7 }
 0x196   : > { %v1230_v45 = vmax.f32 %v1053_v10, 0.0  ;;  %v1232_v43 = vmax.f32 %v1166_v41, 0.0  ;;  %v1293_v57 = vmul.f32 %v1229_v11, %v1229_v11  ;;  %v1295_v42 = vmul.f32 %v1231_v34, %v1231_v34 }
 0x197   : > { %v1989_v18 = vadd.f32 %v3895_v20, %v3872_v53  ;;  %v1997_v16 = vadd.f32 %v3913_v33, %v3907_v28  ;;  %v1990_v22 = vadd.f32 %v1974_v27, %v1951_v40  ;;  %v1991_v47 = vadd.f32 %v1975_v44, %v1952_v24 }
 0x198   : > { %v1294_v4 = vmul.f32 %v1230_v45, %v1230_v45  ;;  %v1296_v7 = vmul.f32 %v1232_v43, %v1232_v43  ;;  %v1325_v56 = vpack.c.bf16 %v1293_v57, %v1289_v13  ;;  %v1327_v60 = vpack.c.bf16 %v1295_v42, %v1291_v14 }
 0x199   : > { %v1998_v29 = vadd.f32 %v1982_v62, %v1959_v51  ;;  %v1999_v25 = vadd.f32 %v1983_v26, %v1960_v61  ;;  %v1878_v37 = vsel %vm457_vm0, %v1855_v5, %v1856_v36  ;;  %v1877_v53 = vsel %vm457_vm0, %v1856_v36, %v1857_v3 }
 0x19a   : > { %v1326_v21 = vpack.c.bf16 %v1294_v4, %v1290_v2  ;;  %v1328_v12 = vpack.c.bf16 %v1296_v7, %v1292_v55  ;;  %v1869_v38 = vsel %vm457_vm0, %v1864_v58, %v1865_v19  ;;  %v1870_v20 = vsel %vm457_vm0, %v1863_v17, %v1864_v58 }
 0x19b   : > { %v2003_v8 = vpack.c.bf16 %v1989_v18, %v3888_v0  ;;  %v2007_v9 = vpack.c.bf16 %v1997_v16, %v1996_v15  ;;  %v1976_v63 = vmul.f32 %v3760_v32, %v1878_v37  ;;  %v1961_v3 = vmul.f32 %v3757_v31, %v1844_v1 }
 0x19c   : > { %1689 = vmatprep.mubr.bf16.mxu0 %v1326_v21  ;;  %1786 = vmatprep.mubr.bf16.mxu1 %v1328_v12  ;;  %v1977_v59 = vmul.f32 %v3760_v32, %v1877_v53  ;;  %v1962_v19 = vmul.f32 %v3757_v31, %v3747_v6  ;;  %v1984_v23 = vmul.f32 %v3760_v32, %v1870_v20 }
 0x19d   : > { %1690 = vmatmul.mubr.bf16.gmra.mxu0 %v1325_v56  ;;  %1787 = vmatmul.mubr.bf16.gmra.mxu1 %v1327_v60  ;;  %v1985_v28 = vmul.f32 %v3760_v32, %v1869_v38  ;;  %v2004_v0 = vpack.c.bf16 %v1991_v47, %v1990_v22  ;;  %v2008_v5 = vpack.c.bf16 %v1999_v25, %v1998_v29 }
 0x19e   : > { %2841 = vmatprep.mubr.bf16.mxu0 %v2002_v49  ;;  %2849 = vmatprep.mubr.bf16.mxu1 %v2006_v46  ;;  %v1953_v49 = vmul.f32 %v3757_v31, %v1836_v52  ;;  %v1993_v33 = vadd.f32 %v1977_v59, %v1954_v50  ;;  %v2000_v54 = vadd.f32 %v1984_v23, %v1961_v3 }
 0x19f   : > { %v2001_v40 = vadd.f32 %v1985_v28, %v1962_v19 }
 0x1a0   : > { %v1992_v46 = vadd.f32 %v1976_v63, %v1953_v49 }
 0x1a1   : > { %v2009_v24 = vpack.c.bf16 %v2001_v40, %v2000_v54 }
 0x1a2   : > { %v2005_v17 = vpack.c.bf16 %v1993_v33, %v1992_v46 }
 0x1a5   : > { %2842 = vmatmul.mubr.bf16.vlgmr.msra.gmra.mxu0 %v2003_v8  ;;  %2850 = vmatmul.mubr.bf16.vlgmr.msra.gmra.mxu1 %v2007_v9 }
 0x1a6   : > { %2845 = vmatprep.mubr.bf16.mxu0 %v2004_v0  ;;  %2853 = vmatprep.mubr.bf16.mxu1 %v2008_v5 }
 0x1ad   : > { %2846 = vmatmul.mubr.bf16.gmra.mxu0 %v2005_v17  ;;  %2854 = vmatmul.mubr.bf16.gmra.mxu1 %v2009_v24 }
 0x225   : > { %v2697_v30 = vpop.f32.mrf.mxu0  ;;  %v2761_v6 = vpop.f32.mrf.mxu1 }
 0x227   : > { %v2698_v31 = vpop.f32.mrf.mxu0  ;;  %v2762_v11 = vpop.f32.mrf.mxu1 }
 0x228   : > { %v2699_v34 = vadd.f32 %v2698_v31, %v2697_v30  ;;  %v2763_v32 = vadd.f32 %v2762_v11, %v2761_v6 }
 0x229   : > { %v2700_v35 = vpop.f32.mrf.mxu0  ;;  %v2764_v39 = vpop.f32.mrf.mxu1 }
 0x22a   : > { %v3991_v10 = vadd.f32 %v2763_v32, %v2699_v34 }
 0x22b   : > { %v2701_v41 = vpop.f32.mrf.mxu0  ;;  %v2765_v27 = vpop.f32.mrf.mxu1 }
 0x22c   : > { %v2702_v44 = vadd.f32 %v2701_v41, %v2700_v35  ;;  %v2766_v45 = vadd.f32 %v2765_v27, %v2764_v39 }
 0x22d   : > { %v2703_v43 = vpop.f32.mrf.mxu0  ;;  %v2767_v48 = vpop.f32.mrf.mxu1 }
 0x22e   : > { %v3993_v51 = vadd.f32 %v2766_v45, %v2702_v44 }
 0x22f   : > { %v2704_v52 = vpop.f32.mrf.mxu0  ;;  %v2768_v57 = vpop.f32.mrf.mxu1 }
 0x230   : > { %v2705_v42 = vadd.f32 %v2704_v52, %v2703_v43  ;;  %v2769_v61 = vadd.f32 %v2768_v57, %v2767_v48 }
 0x231   : > { %v2706_v62 = vpop.f32.mrf.mxu0  ;;  %v2770_v1 = vpop.f32.mrf.mxu1 }
 0x232   : > { %v3995_v2 = vadd.f32 %v2769_v61, %v2705_v42 }
 0x233   : > { %v2707_v55 = vpop.f32.mrf.mxu0  ;;  %v2771_v4 = vpop.f32.mrf.mxu1 }
 0x234   : > { %v2708_v7 = vadd.f32 %v2707_v55, %v2706_v62  ;;  %v2772_v13 = vadd.f32 %v2771_v4, %v2770_v1 }
 0x235   : > { %v2709_v14 = vpop.f32.mrf.mxu0  ;;  %v2773_v26 = vpop.f32.mrf.mxu1 }
 0x236   : > { %v3997_v36 = vadd.f32 %v2772_v13, %v2708_v7 }
 0x237   : > { %v2710_v21 = vpop.f32.mrf.mxu0  ;;  %v2774_v12 = vpop.f32.mrf.mxu1 }
 0x238   : > { %v2711_v15 = vadd.f32 %v2710_v21, %v2709_v14  ;;  %v2775_v58 = vadd.f32 %v2774_v12, %v2773_v26 }
 0x239   : > { %v2712_v56 = vpop.f32.mrf.mxu0  ;;  %v2776_v60 = vpop.f32.mrf.mxu1 }
 0x23a   : > { %v3999_v18 = vadd.f32 %v2775_v58, %v2711_v15 }
 0x23b   : > { %v2713_v16 = vpop.f32.mrf.mxu0  ;;  %v2777_v22 = vpop.f32.mrf.mxu1 }
 0x23c   : > { %v2714_v47 = vadd.f32 %v2713_v16, %v2712_v56  ;;  %v2778_v29 = vadd.f32 %v2777_v22, %v2776_v60 }
 0x23d   : > { %v2715_v25 = vpop.f32.mrf.mxu0  ;;  %v2779_v37 = vpop.f32.mrf.mxu1 }
 0x23e   : > { %v4001_v53 = vadd.f32 %v2778_v29, %v2714_v47 }
 0x23f   : > { %v2716_v38 = vpop.f32.mrf.mxu0  ;;  %v2780_v20 = vpop.f32.mrf.mxu1 }
 0x240   : > { %v2717_v8 = vadd.f32 %v2716_v38, %v2715_v25  ;;  %v2781_v9 = vadd.f32 %v2780_v20, %v2779_v37 }
 0x241   : > { %v2718_v49 = vpop.f32.mrf.mxu0  ;;  %v2782_v50 = vpop.f32.mrf.mxu1 }
 0x242   : > { %v4003_v63 = vadd.f32 %v2781_v9, %v2717_v8 }
 0x243   : > { %v2719_v3 = vpop.f32.mrf.mxu0  ;;  %v2783_v59 = vpop.f32.mrf.mxu1 }
 0x244   : > { %v2720_v19 = vadd.f32 %v2719_v3, %v2718_v49  ;;  %v2784_v23 = vadd.f32 %v2783_v59, %v2782_v50 }
 0x245   : > { %v4005_v28 = vpop.f32.mrf.mxu0  ;;  %v4007_v0 = vpop.f32.mrf.mxu1 }
 0x246   : > { %v4009_v5 = vadd.f32 %v2784_v23, %v2720_v19 }
 0x247   : > { %v4011_v46 = vpop.f32.mrf.mxu0  ;;  %v4013_v33 = vpop.f32.mrf.mxu1 }
 0x249   : > { %v4015_v54 = vpop.f32.mrf.mxu0  ;;  %v4017_v40 = vpop.f32.mrf.mxu1 }
 0x24b   : > { %v4019_v17 = vpop.f32.mrf.mxu0  ;;  %v4021_v24 = vpop.f32.mrf.mxu1 }
 0x24d   : > { %v4023_v30 = vpop.f32.mrf.mxu0  ;;  %v4025_v6 = vpop.f32.mrf.mxu1 }
 0x24f   : > { %v4027_v31 = vpop.f32.mrf.mxu0  ;;  %v4029_v11 = vpop.f32.mrf.mxu1 }
 0x251   : > { %v4031_v34 = vpop.f32.mrf.mxu0  ;;  %v4033_v32 = vpop.f32.mrf.mxu1 }
 0x253   : > { %v4035_v35 = vpop.f32.mrf.mxu0  ;;  %v4037_v39 = vpop.f32.mrf.mxu1 }
 0x255   : > { %v4039_v41 = vpop.f32.mrf.mxu0  ;;  %v4041_v27 = vpop.f32.mrf.mxu1 }
 0x257   : > { %v4043_v44 = vpop.f32.mrf.mxu0  ;;  %v4045_v45 = vpop.f32.mrf.mxu1 }
 0x259   : > { %v4047_v43 = vpop.f32.mrf.mxu0  ;;  %v4049_v48 = vpop.f32.mrf.mxu1 }
 0x25b   : > { %v4051_v52 = vpop.f32.mrf.mxu0  ;;  %v4053_v57 = vpop.f32.mrf.mxu1 }
 0x25d   : > { %v4055_v42 = vpop.f32.mrf.mxu0  ;;  %v4057_v61 = vpop.f32.mrf.mxu1 }
 0x25f   : > { %v4059_v62 = vpop.f32.mrf.mxu0  ;;  %v4061_v1 = vpop.f32.mrf.mxu1 }
 0x261   : > { %v4063_v55 = vpop.f32.mrf.mxu0  ;;  %v4065_v4 = vpop.f32.mrf.mxu1 }
 0x263   : > { %v4067_v7 = vpop.f32.mrf.mxu0  ;;  %v4069_v13 = vpop.f32.mrf.mxu1 }
 0x265   : > { %v2843_v14 = vpop.f32.mrf.mxu0  ;;  %v2851_v26 = vpop.f32.mrf.mxu1 }
 0x266   : > { %v2593_v21 = vmul.f32 -1.442695, %v2843_v14  ;;  %v2601_v12 = vmul.f32 -1.442695, %v2851_v26 }
 0x267   : > { %v2108_v15 = vpop.f32.mrf.mxu0  ;;  %v2140_v58 = vpop.f32.mrf.mxu1 }
 0x268   : > { %3077 = vpow2.f32 %v2593_v21  ;;  %v2591_v56 = vmul.f32 -1.442695, %v2108_v15  ;;  %v2599_v60 = vmul.f32 -1.442695, %v2140_v58 }
 0x269   : > { %3079 = vpow2.f32 %v2601_v12  ;;  %v2844_v16 = vpop.f32.mrf.mxu0  ;;  %v2852_v22 = vpop.f32.mrf.mxu1 }
 0x26a   : > { %3081 = vpow2.f32 %v2591_v56  ;;  %v2594_v47 = vmul.f32 -1.442695, %v2844_v16  ;;  %v2602_v29 = vmul.f32 -1.442695, %v2852_v22 }
 0x26b   : > { %3083 = vpow2.f32 %v2599_v60  ;;  %v2111_v25 = vpop.f32.mrf.mxu0  ;;  %v2143_v37 = vpop.f32.mrf.mxu1 }
 0x26c   : > { %3085 = vpow2.f32 %v2594_v47  ;;  %v2592_v38 = vmul.f32 -1.442695, %v2111_v25  ;;  %v2600_v20 = vmul.f32 -1.442695, %v2143_v37 }
 0x26d   : > { %3087 = vpow2.f32 %v2602_v29  ;;  %v2847_v8 = vpop.f32.mrf.mxu0  ;;  %v2855_v9 = vpop.f32.mrf.mxu1 }
 0x26e   : > { %3089 = vpow2.f32 %v2592_v38  ;;  %v2597_v49 = vmul.f32 -1.442695, %v2847_v8  ;;  %v2605_v50 = vmul.f32 -1.442695, %v2855_v9 }
 0x26f   : > { %3091 = vpow2.f32 %v2600_v20  ;;  %v2124_v3 = vpop.f32.mrf.mxu0  ;;  %v2156_v59 = vpop.f32.mrf.mxu1 }
 0x270   : > { %3093 = vpow2.f32 %v2597_v49  ;;  %v2595_v19 = vmul.f32 -1.442695, %v2124_v3  ;;  %v2603_v23 = vmul.f32 -1.442695, %v2156_v59 }
 0x271   : > { %3095 = vpow2.f32 %v2605_v50  ;;  %v2848_v14 = vpop.f32.mrf.mxu0  ;;  %v2856_v26 = vpop.f32.mrf.mxu1 }
 0x272   : > { %3097 = vpow2.f32 %v2595_v19  ;;  %v2598_v21 = vmul.f32 -1.442695, %v2848_v14  ;;  %v2606_v12 = vmul.f32 -1.442695, %v2856_v26 }
 0x273   : > { %3099 = vpow2.f32 %v2603_v23  ;;  %v2127_v15 = vpop.f32.mrf.mxu0  ;;  %v2159_v58 = vpop.f32.mrf.mxu1 }
 0x274   : > { %3101 = vpow2.f32 %v2598_v21  ;;  %v2596_v56 = vmul.f32 -1.442695, %v2127_v15  ;;  %v2604_v60 = vmul.f32 -1.442695, %v2159_v58 }
 0x275   : > { %v3078_v16 = vpop.eup %3077  ;;  %3103 = vpow2.f32 %v2606_v12 }
 0x276   : > { %v3080_v22 = vpop.eup %3079  ;;  %v2221_v47 = vadd.f32 1.0, %v3078_v16  ;;  %3105 = vpow2.f32 %v2596_v56  ;;  %v2729_v56 = vadd.f32 %v4027_v31, %v4023_v30 }
 0x277   : > { %v3082_v29 = vpop.eup %3081  ;;  %v2229_v25 = vadd.f32 1.0, %v3080_v22  ;;  %3107 = vpow2.f32 %v2604_v60  ;;  %v2793_v60 = vadd.f32 %v4029_v11, %v4025_v6 }
 0x278   : > { %v3084_v37 = vpop.eup %3083  ;;  %3109 = vrcp.f32 %v2221_v47  ;;  %v2219_v38 = vadd.f32 1.0, %v3082_v29 }
 0x279   : > { %v3086_v20 = vpop.eup %3085  ;;  %3111 = vrcp.f32 %v2229_v25  ;;  %v2227_v8 = vadd.f32 1.0, %v3084_v37  ;;  %v2723_v25 = vadd.f32 %v4011_v46, %v4005_v28  ;;  %v2787_v37 = vadd.f32 %v4013_v33, %v4007_v0 }
 0x27a   : > { %v3088_v9 = vpop.eup %3087  ;;  %3113 = vrcp.f32 %v2219_v38  ;;  %v2222_v49 = vadd.f32 1.0, %v3086_v20  ;;  %v2796_v28 = vadd.f32 %v4037_v39, %v4033_v32 }
 0x27b   : > { %v3090_v50 = vpop.eup %3089  ;;  %3115 = vrcp.f32 %v2227_v8  ;;  %v2230_v3 = vadd.f32 1.0, %v3088_v9  ;;  %v1773_v8 = vadd.f32 %v2793_v60, %v2729_v56  ;;  %v2732_v9 = vadd.f32 %v4035_v35, %v4031_v34 }
 0x27c   : > { %v3092_v59 = vpop.eup %3091  ;;  %3117 = vrcp.f32 %v2222_v49  ;;  %v2220_v19 = vadd.f32 1.0, %v3090_v50  ;;  %v1765_v33 = vadd.f32 %v2787_v37, %v2723_v25 }
 0x27d   : > { %v3094_v23 = vpop.eup %3093  ;;  %3119 = vrcp.f32 %v2230_v3  ;;  %v2228_v14 = vadd.f32 1.0, %v3092_v59  ;;  %v2726_v3 = vadd.f32 %v4019_v17, %v4015_v54  ;;  %v2790_v59 = vadd.f32 %v4021_v24, %v4017_v40 }
 0x27e   : > { %v3096_v26 = vpop.eup %3095  ;;  %3121 = vrcp.f32 %v2220_v19  ;;  %v2225_v21 = vadd.f32 1.0, %v3094_v23  ;;  %v1776_v35 = vadd.f32 %v2796_v28, %v2732_v9  ;;  %v2741_v54 = vadd.f32 %v4059_v62, %v4055_v42 }
 0x27f   : > { %v3098_v12 = vpop.eup %3097  ;;  %3123 = vrcp.f32 %v2228_v14  ;;  %v2233_v15 = vadd.f32 1.0, %v3096_v26  ;;  %v2805_v40 = vadd.f32 %v4061_v1, %v4057_v61  ;;  %v1768_v14 = vadd.f32 %v2790_v59, %v2726_v3 }
 0x280   : > { %v3100_v58 = vpop.eup %3099  ;;  %3125 = vrcp.f32 %v2225_v21  ;;  %v2223_v16 = vadd.f32 1.0, %v3098_v12  ;;  %v2799_v26 = vadd.f32 %v4045_v45, %v4041_v27  ;;  %v2808_v12 = vadd.f32 %v4069_v13, %v4065_v4 }
 0x281   : > { %v3102_v22 = vpop.eup %3101  ;;  %3127 = vrcp.f32 %v2233_v15  ;;  %v2231_v47 = vadd.f32 1.0, %v3100_v58  ;;  %v1789_v21 = vadd.f32 %v2805_v40, %v2741_v54  ;;  %v2738_v15 = vadd.f32 %v4051_v52, %v4047_v43 }
 0x282   : > { %v3104_v29 = vpop.eup %3103  ;;  %3129 = vrcp.f32 %v2223_v16  ;;  %v2226_v38 = vadd.f32 1.0, %v3102_v22 }
 0x283   : > { %v3106_v20 = vpop.eup %3105  ;;  %3131 = vrcp.f32 %v2231_v47  ;;  %v2234_v30 = vadd.f32 1.0, %v3104_v29 }
 0x284   : > { %v3108_v31 = vpop.eup %3107  ;;  %3133 = vrcp.f32 %v2226_v38  ;;  %v2224_v6 = vadd.f32 1.0, %v3106_v20 }
 0x285   : > { %v3110_v11 = vpop.eup %3109  ;;  %3135 = vrcp.f32 %v2234_v30  ;;  %v2232_v46 = vadd.f32 1.0, %v3108_v31 }
 0x286   : > { %v3112_v0 = vpop.eup %3111  ;;  %v2285_v49 = vmul.f32 %v3110_v11, %v3995_v2  ;;  %3137 = vrcp.f32 %v2224_v6 }
 0x287   : > { %v3114_v50 = vpop.eup %3113  ;;  %v2293_v19 = vmul.f32 %v3112_v0, %v1773_v8  ;;  %3139 = vrcp.f32 %v2232_v46 }
 0x288   : > { %v3116_v34 = vpop.eup %3115  ;;  %2301 = vst [vmem:[%s4090_s17 + $0x10] sm:$0xff] %v2285_v49  ;;  %v2283_v2 = vmul.f32 %v3114_v50, %v3991_v10  ;;  %v2735_v10 = vadd.f32 %v4043_v44, %v4039_v41 }
 0x289   : > { %v3118_v32 = vpop.eup %3117  ;;  %2309 = vst [vmem:[%s4090_s17 + $0x50] sm:$0xff] %v2293_v19  ;;  %v2291_v17 = vmul.f32 %v3116_v34, %v1765_v33 }
 0x28a   : > { %v3120_v24 = vpop.eup %3119  ;;  %2299 = vst [vmem:[%s4090_s17] sm:$0xff] %v2283_v2  ;;  %v2286_v39 = vmul.f32 %v3118_v32, %v3997_v36  ;;  %v2744_v36 = vadd.f32 %v4067_v7, %v4063_v55  ;;  %v2802_v55 = vadd.f32 %v4053_v57, %v4049_v48 }
 0x28b   : > { %v3122_v23 = vpop.eup %3121  ;;  %2307 = vst [vmem:[%s4090_s17 + $0x40] sm:$0xff] %v2291_v17  ;;  %v2294_v42 = vmul.f32 %v3120_v24, %v1776_v35 }
 0x28c   : > { %v3124_v62 = vpop.eup %3123  ;;  %2302 = vst [vmem:[%s4090_s17 + $0x18] sm:$0xff] %v2286_v39  ;;  %v2284_v61 = vmul.f32 %v3122_v23, %v3993_v51  ;;  %v1781_v51 = vadd.f32 %v2799_v26, %v2735_v10  ;;  %v1792_v56 = vadd.f32 %v2808_v12, %v2744_v36  ;;  %v1784_v57 = vadd.f32 %v2802_v55, %v2738_v15 }
 0x28d   : > { %v3126_v1 = vpop.eup %3125  ;;  %2310 = vst [vmem:[%s4090_s17 + $0x58] sm:$0xff] %v2294_v42  ;;  %v2292_v41 = vmul.f32 %v3124_v62, %v1768_v14 }
 0x28e   : > { %v3128_v27 = vpop.eup %3127  ;;  %2300 = vst [vmem:[%s4090_s17 + $0x8] sm:$0xff] %v2284_v61  ;;  %v2289_v44 = vmul.f32 %v3126_v1, %v4003_v63 }
 0x28f   : > { %v3130_v45 = vpop.eup %3129  ;;  %2308 = vst [vmem:[%s4090_s17 + $0x48] sm:$0xff] %v2292_v41  ;;  %v2297_v4 = vmul.f32 %v3128_v27, %v1789_v21 }
 0x290   : > { %v3132_v7 = vpop.eup %3131  ;;  %2305 = vst [vmem:[%s4090_s17 + $0x30] sm:$0xff] %v2289_v44  ;;  %v2287_v13 = vmul.f32 %v3130_v45, %v3999_v18 }
 0x291   : > { %v3134_v58 = vpop.eup %3133  ;;  %2313 = vst [vmem:[%s4090_s17 + $0x70] sm:$0xff] %v2297_v4  ;;  %v2295_v63 = vmul.f32 %v3132_v7, %v1781_v51 }
 0x292   : > { %v3136_v43 = vpop.eup %3135  ;;  %2303 = vst [vmem:[%s4090_s17 + $0x20] sm:$0xff] %v2287_v13  ;;  %v2290_v48 = vmul.f32 %v3134_v58, %v4009_v5 }
 0x293   : > { %v3138_v52 = vpop.eup %3137  ;;  %2311 = vst [vmem:[%s4090_s17 + $0x60] sm:$0xff] %v2295_v63  ;;  %v2298_v60 = vmul.f32 %v3136_v43, %v1792_v56 }
 0x294   : > { %v3140_v18 = vpop.eup %3139  ;;  %2306 = vst [vmem:[%s4090_s17 + $0x38] sm:$0xff] %v2290_v48  ;;  %v2288_v16 = vmul.f32 %v3138_v52, %v4001_v53 }
 0x295   : > { %2314 = vst [vmem:[%s4090_s17 + $0x78] sm:$0xff] %v2298_v60  ;;  %v2296_v5 = vmul.f32 %v3140_v18, %v1784_v57 }
 0x296   : > { %2304 = vst [vmem:[%s4090_s17 + $0x28] sm:$0xff] %v2288_v16 }
 0x297   : > { %2312 = vst [vmem:[%s4090_s17 + $0x68] sm:$0xff] %v2296_v5 }
 0x298   : > { %3288 = shalt.err (!%p3285_p1)
}
 0x299   : > { %s3289_s29 = scalar_lea.hbm %s4133_s27, 2048  ;;  %s3293_s5 = scalar_lea.hbm %s4193_s7, 4096 }
 0x29a   : > { %p3290_p7 = scmp.ne.s32.totalorder %s4133_s27, %s3289_s29  ;;  %p3294_p0 = scmp.lt.s32.totalorder %s4133_s27, %s4193_s7 }
 0x29b   : > { %p3295_p11 = scmp.lt.s32.totalorder %s3293_s5, %s3289_s29 }
 0x29c   : > { %p3291_p8 = pnand %p3290_p7, %p3528_p2 }
 0x29d   : > { %p3296_p4 = por %p3295_p11, %p3294_p0 }
 0x29e   : > { %p3292_p13 = pneg %p3291_p8 }
 0x2a0   : > { %p3297_p9 = pnand %p3296_p4, %p3292_p13 }
 0x2a2   : > { %3300 = shalt.err (!%p3297_p9)
}
 0x2a3   : > { %s3383_s13 = smov 128   ;;  %s3384_s30 = smov 8  }
 0x2a4   : > { %2889 = dma.vmem_to_hbm [thread:$0]  (%p3528_p2), %s4135_s20, 2048, %s4133_s27, %s2316_s22, %s3383_s13, %s3383_s13, %s3384_s30  }
 0x2a5 PF: > { %s4228_s21 = sld [smem:[#allocation20_spill]]  ;;  %s2345_s23 = sand.u32 1, %s3347_s24  }
 0x2a6   : > { %s2346_s17 = scalar_lea.sflag [#allocation6], %s2345_s23 }
 0x2ab   : > { %p4229_p5 = scmp.ge.s32.totalorder %s4228_s21, 2 }
 0x2ad   : > { %p2909_p12 = pnand %p4229_p5, %p3470_p6 }
 0x2af   : > { %p2910_p10 = pneg %p2909_p12 }
 0x2b1   : > { %3342 = dma.done.wait (%p2910_p10), %s2346_s17, 2048  }
 0x2b2   : > { %3344 = vsyncadd (%p2910_p10), %s2346_s17, 4294965248  ;;  %s27_s29 = sadd.s32 1, %s4228_s21   ;;  %s4230_s18 = sld [smem:[#allocation19_spill]] }
 0x2b3   : > { %p24_p3 = scmp.ge.s32.totalorder %s27_s29, 4   ;;  %s4231_s26 = sld [smem:[#allocation23_spill]] }
 0x2b4   : > { %s4232_s12 = sld [smem:[#allocation22_spill]]  ;;  %s4233_s24 = smov %s3351_s25 }
 0x2b5   : > { %s4235_s27 = smov %s3363_s28 }
 0x2b6   :  { %26 = sbr.rel (!%p24_p3) target bundleno = 14 (0xe), region = 128 }
 0x2b8   : > { %s4234_s25 = smov %s4230_s18 }
 0x2ba   : > { %s4236_s28 = smov %s4232_s12 }
 0x2bb   :  { %2351 = vsyncpa [#allocation5], 1 }
 0x2bc   :  { %2353 = vsyncpa [#allocation5 + $0x1], 1 }
 0x2bd   :  { %2354 = vsyncpa [#allocation8], 1 }
 0x2be   :  { %2356 = vsyncpa [#allocation8 + $0x1], 1 }
 0x2bf   :  { %2357 = vsyncpa [#allocation11], 1 }
 0x2c0   :  { %2358 = vsyncpa [#allocation6], 1 }
 0x2c1   :  { %2360 = vsyncpa [#allocation6 + $0x1], 1 }

</bundles_post_ra>
